<compile_context>
chip_gen: v5e
topology: v5e:2x2
jax: 0.10.0
libtpu: 0.0.40
codegen_flags: <defaults>
</compile_context>

<pallas_src>
from functools import partial

import numpy as np
import jax
import jax.numpy as jnp
from jax.experimental import pallas as pl
from jax.experimental.pallas import tpu as pltpu

C_LIGHT = 3.0e8


# --------------------------------------------------------------------------
# "__init__" buffers (deterministic, computed from the module's formulas)
# --------------------------------------------------------------------------
def _gaussian_window(m, std):
    n = np.arange(m) - (m - 1) / 2.0
    return np.exp(-0.5 * (n / std) ** 2)


def build_rsd_buffers(t, d, h, w, wall_size=2.0, bin_len=0.02, zmin=0.0,
                      zmax=2.0, scale_coef=1.0, n_cycles=4, ratio=0.1):
    """Precompute the constant RSD buffers.

    Returns:
      freq_idx : (F_pad,) int32   kept rfft bins (padded with dummy bin 0)
      k_r, k_i : (F_pad, d, h*w) float32   real/imag of coefs*phase*frsd
                 (per-frequency coefs folded in; padded rows are all-zero)
    """
    assert t % 2 == 0
    bin_resolution = bin_len / C_LIGHT
    sampling_freq = 1.0 / bin_resolution
    wall_spacing = wall_size / h
    wavelength = scale_coef * 2.0 * wall_spacing

    # _define_wave
    samples = round(n_cycles * wavelength / bin_len)
    n_cyc = samples * bin_len / wavelength
    idx = np.arange(samples) + 1
    sinusoid = np.exp(1j * 2 * np.pi * n_cyc * idx / samples)
    win = _gaussian_window(samples, (samples - 1) / 2 * 0.3)
    wave = sinusoid * win
    if len(wave) < t:
        wave = np.pad(wave, (0, t - len(wave)))
    fwave = np.abs(np.fft.fft(wave) / t)[: len(wave) // 2 + 1]
    coef_ratio = fwave / np.max(fwave)
    freq_idx = np.where(coef_ratio > ratio)[0]
    freqs = sampling_freq * freq_idx / t
    omegas = 2 * np.pi * freqs
    coefs = fwave[freq_idx].astype(np.float64)

    # depth axis
    zdim = np.linspace(zmin, zmax, d + 1)
    zdim = (zdim[:-1] + zdim[1:]) / 2

    # _define_rsd   (efficient=True -> NO zero padding before fft2)
    width = wall_size / 2
    ydim = np.linspace(width, -width, h + 1)
    xdim = np.linspace(-width, width, w + 1)
    ydim = (ydim[:-1] + ydim[1:]) / 2
    xdim = (xdim[:-1] + xdim[1:]) / 2
    zgrid, ygrid, xgrid = np.meshgrid(zdim, ydim, xdim, indexing='ij')
    dgrid = np.sqrt(xgrid ** 2 + ygrid ** 2 + zgrid ** 2).reshape(1, d, h, w)
    om = omegas.reshape(-1, 1, 1, 1)
    rsd = np.exp(1j * om / C_LIGHT * dgrid) / dgrid
    frsd = np.fft.fft2(rsd)                                   # (F, d, h, w)
    tgrid = (zdim / C_LIGHT).reshape(1, -1, 1, 1)
    phase = np.exp(1j * om * tgrid)                           # (F, d, 1, 1)

    # Fold the per-frequency coefficient into the constant kernel:
    # fft2(coefs_f * fdata_f) == coefs_f * fft2(fdata_f)  (fft2 is linear),
    # so coefs can be baked into K and dropped from the runtime glue.
    K = (coefs.reshape(-1, 1, 1, 1) * phase * frsd).astype(np.complex64)

    n_freq = len(freq_idx)
    f_pad = ((n_freq + 7) // 8) * 8            # pack sublanes cleanly
    k_r = np.real(K).reshape(n_freq, d, h * w).astype(np.float32)
    k_i = np.imag(K).reshape(n_freq, d, h * w).astype(np.float32)
    if f_pad != n_freq:
        pad = ((0, f_pad - n_freq), (0, 0), (0, 0))
        k_r = np.pad(k_r, pad)                 # zero rows -> contribute 0
        k_i = np.pad(k_i, pad)
        freq_idx = np.pad(freq_idx, (0, f_pad - n_freq))   # dummy bin 0
    return freq_idx.astype(np.int32), k_r, k_i


# --------------------------------------------------------------------------
# Pallas kernel: fvol[n,d,p] = sum_f fsrc[n,f,p] * K[f,d,p]   (complex)
# --------------------------------------------------------------------------
def _freq_sum_kernel(sr_ref, si_ref, kr_ref, ki_ref, vr_ref, vi_ref):
    """Complex MAC reduction over the frequency axis.

    The reduction over f is an explicit accumulation into two (D, pblk) f32
    accumulators (no (F, D, pblk) broadcast temporaries -> bounded live vregs,
    no spills).  The n loop is kept outermost so the accumulator set stays
    O(D*pblk); re-reading each K slice from VMEM once per n is hidden under
    the 8-op-per-MAC VALU work (vld demand is a small fraction of VALU demand).
    """
    n_batch, n_freq, pblk = sr_ref.shape
    d = kr_ref.shape[1]
    for n in range(n_batch):                 # small static unroll (bs*c)
        acc_r = jnp.zeros((d, pblk), jnp.float32)
        acc_i = jnp.zeros((d, pblk), jnp.float32)
        for f in range(n_freq):              # F is padded to a multiple of 8
            a = sr_ref[n, f:f + 1, :]                        # (1, pblk) f32
            b = si_ref[n, f:f + 1, :]
            kr = kr_ref[f].astype(jnp.float32)               # (d, pblk)
            ki = ki_ref[f].astype(jnp.float32)
            acc_r = acc_r + (a * kr - b * ki)
            acc_i = acc_i + (a * ki + b * kr)
        vr_ref[n] = acc_r                     # full-tile, lane-dense store
        vi_ref[n] = acc_i


def _choose_pblk(n, f, d, p, k_itemsize, budget_bytes=12 * 1024 * 1024,
                 max_pblk=1024):
    """Largest lane tile (multiple of 128) whose double-buffered per-step
    footprint fits a conservative VMEM budget (safe against v7x's 64 MiB
    physical / 32 MiB default-scoped VMEM as well as v5e/v6e).  Capped at
    1024 lanes to keep the (D, pblk) register accumulators spill-free."""
    p128 = ((p + 127) // 128) * 128

    def footprint(pb):
        ins = 2 * n * f * 4 + 2 * f * d * k_itemsize    # sr/si + kr/ki
        outs = 2 * n * d * 4                            # vr/vi
        return 2 * (ins + outs) * pb                    # x2: double buffering

    pblk = 128
    for cand in (1024, 512, 256, 128):
        if cand <= max_pblk and footprint(cand) <= budget_bytes:
            pblk = cand
            break
    return min(pblk, p128)


def freq_sum_pallas(sr, si, kr, ki, pblk=None):
    """vr + i*vi = einsum('nfp,fdp->ndp', sr + i*si, kr + i*ki)."""
    n, f, p = sr.shape
    fk, d, pk = kr.shape
    assert fk == f and pk == p

    # Pad F to a multiple of 8 (no-op when build_rsd_buffers already padded).
    f_pad = ((f + 7) // 8) * 8
    if f_pad != f:
        sr = jnp.pad(sr, ((0, 0), (0, f_pad - f), (0, 0)))
        si = jnp.pad(si, ((0, 0), (0, f_pad - f), (0, 0)))
        kr = jnp.pad(kr, ((0, f_pad - f), (0, 0), (0, 0)))
        ki = jnp.pad(ki, ((0, f_pad - f), (0, 0), (0, 0)))

    if pblk is None:
        pblk = _choose_pblk(n, f_pad, d, p, jnp.dtype(kr.dtype).itemsize)

    # Robust grid: pad P to a multiple of the tile so all stores are full,
    # lane-dense (unmasked) 128-lane stores; padded lanes are sliced off.
    p_pad = pl.cdiv(p, pblk) * pblk
    if p_pad != p:
        sr = jnp.pad(sr, ((0, 0), (0, 0), (0, p_pad - p)))
        si = jnp.pad(si, ((0, 0), (0, 0), (0, p_pad - p)))
        kr = jnp.pad(kr, ((0, 0), (0, 0), (0, p_pad - p)))
        ki = jnp.pad(ki, ((0, 0), (0, 0), (0, p_pad - p)))

    grid = (p_pad // pblk,)
    src_spec = pl.BlockSpec((n, f_pad, pblk), lambda i: (0, 0, i))
    k_spec = pl.BlockSpec((f_pad, d, pblk), lambda i: (0, 0, i))
    out_spec = pl.BlockSpec((n, d, pblk), lambda i: (0, 0, i))
    out_shape = (jax.ShapeDtypeStruct((n, d, p_pad), jnp.float32),
                 jax.ShapeDtypeStruct((n, d, p_pad), jnp.float32))

    vr, vi = pl.pallas_call(
        _freq_sum_kernel,
        out_shape=out_shape,
        grid=grid,
        in_specs=[src_spec, src_spec, k_spec, k_spec],
        out_specs=(out_spec, out_spec),
        compiler_params=pltpu.CompilerParams(
            dimension_semantics=("parallel",)),   # shards across TCs on v7x
    )(sr, si, kr, ki)

    if p_pad != p:
        vr = vr[..., :p]
        vi = vi[..., :p]
    return vr, vi


# --------------------------------------------------------------------------
# Forward pass (glue in plain JAX, hot path in Pallas)
# --------------------------------------------------------------------------
@partial(jax.jit, static_argnames=('sqrt',))
def rsd_efficient_forward(x, freq_idx, k_r, k_i, sqrt=True):
    bs, c, t, h, w = x.shape
    n = bs * c
    f = int(freq_idx.shape[0])
    d = int(k_r.shape[1])
    p = h * w

    tdata = x.reshape(n, t, h, w)
    # TODO(synk): FFTs have no Pallas primitive; they remain XLA ops (jnp.fft).
    fdata = jnp.fft.rfft(tdata, axis=1)                 # (n, t//2+1, h, w)
    fdata = fdata[:, freq_idx]                          # (n, f, h, w)
    # NOTE: per-frequency coefs are folded into k_r/k_i at init (fft2 is
    # linear), so the original `coefs * fdata` pass is not needed here.
    fsrc = jnp.fft.fft2(fdata, axes=(-2, -1))           # (n, f, h, w)

    sr = jnp.real(fsrc).reshape(n, f, p).astype(jnp.float32)
    si = jnp.imag(fsrc).reshape(n, f, p).astype(jnp.float32)

    vr, vi = freq_sum_pallas(sr, si, k_r, k_i)          # (n, d, p) each

    fvol = (vr + 1j * vi).reshape(n, d, h, w)
    tvol = jnp.fft.ifft2(fvol, axes=(-2, -1))
    tvol = jnp.fft.ifftshift(tvol, axes=(-2, -1))
    tvol = jnp.abs(tvol)
    if not sqrt:
        tvol = tvol ** 2
    out = tvol.reshape(bs, c, d, h, w)

    # MaxNorm (per_channel=True) + 'linear' activation
    m = jnp.max(jnp.abs(out), axis=(-3, -2, -1), keepdims=True)
    out = out / jnp.maximum(m, 1e-12)
    return out


# --------------------------------------------------------------------------
if __name__ == "__main__":
    # small RSDEfficient config
    T, D, H, W = 64, 8, 16, 16
    IN_PLANE = 2
    BS = 2

    freq_idx, k_r, k_i = build_rsd_buffers(T, D, H, W)

    key = jax.random.PRNGKey(0)
    x = jax.random.normal(key, (BS, IN_PLANE, T, H, W), dtype=jnp.float32)

    # K dominates HBM traffic -> store it in bf16; kernel casts to f32.
    k_r_j = jnp.asarray(k_r, dtype=jnp.bfloat16)
    k_i_j = jnp.asarray(k_i, dtype=jnp.bfloat16)
    freq_idx_j = jnp.asarray(freq_idx)

    out = rsd_efficient_forward(x, freq_idx_j, k_r_j, k_i_j, D)
    out = jax.block_until_ready(out)

    # sanity check of the Pallas frequency-sum against a pure-JAX reference
    # (reference uses the same bf16 K upcast to f32, full-precision einsum)
    n = BS * IN_PLANE
    f = int(freq_idx_j.shape[0])
    p = H * W
    fdata = jnp.fft.rfft(x.reshape(n, T, H, W), axis=1)[:, freq_idx_j]
    fsrc = jnp.fft.fft2(fdata, axes=(-2, -1))
    sr = jnp.real(fsrc).reshape(n, f, p).astype(jnp.float32)
    si = jnp.imag(fsrc).reshape(n, f, p).astype(jnp.float32)
    vr, vi = freq_sum_pallas(sr, si, k_r_j, k_i_j)
    kr32 = k_r_j.astype(jnp.float32)
    ki32 = k_i_j.astype(jnp.float32)
    hi = jax.lax.Precision.HIGHEST
    vr_ref = (jnp.einsum('nfp,fdp->ndp', sr, kr32, precision=hi)
              - jnp.einsum('nfp,fdp->ndp', si, ki32, precision=hi))
    vi_ref = (jnp.einsum('nfp,fdp->ndp', sr, ki32, precision=hi)
              + jnp.einsum('nfp,fdp->ndp', si, kr32, precision=hi))
    scale = float(jnp.max(jnp.abs(vr_ref))) + 1e-12
    err_r = float(jnp.max(jnp.abs(vr - vr_ref))) / scale
    err_i = float(jnp.max(jnp.abs(vi - vi_ref))) / scale
    assert err_r < 1e-3 and err_i < 1e-3, (err_r, err_i)
    assert out.shape == (BS, IN_PLANE, D, H, W)
    assert bool(jnp.all(jnp.isfinite(out)))

    print("KERNEL_OK")
</pallas_src>

<mosaic_0001>
module attributes {stable_mosaic.version = 11 : i64} {
  func.func @_freq_sum_kernel(%arg0: i32, %arg1: memref<4x8x256xf32, #tpu.memory_space<vmem>>, %arg2: memref<4x8x256xf32, #tpu.memory_space<vmem>>, %arg3: memref<8x8x256xbf16, #tpu.memory_space<vmem>>, %arg4: memref<8x8x256xbf16, #tpu.memory_space<vmem>>, %arg5: memref<4x8x256xf32, #tpu.memory_space<vmem>>, %arg6: memref<4x8x256xf32, #tpu.memory_space<vmem>>) attributes {dimension_semantics = [#tpu.dimension_semantics<parallel>], iteration_bounds = array<i64: 1>, scalar_prefetch = 0 : i64, scratch_operands = 0 : i64, tpu.core_type = #tpu.core_type<tc>, window_params = [{transform_indices = @transform_0, window_bounds = array<i64: 4, 8, 256>}, {transform_indices = @transform_1, window_bounds = array<i64: 4, 8, 256>}, {transform_indices = @transform_2, window_bounds = array<i64: 8, 8, 256>}, {transform_indices = @transform_3, window_bounds = array<i64: 8, 8, 256>}, {transform_indices = @transform_4, window_bounds = array<i64: 4, 8, 256>}, {transform_indices = @transform_5, window_bounds = array<i64: 4, 8, 256>}]} {
    %cst = arith.constant 0.000000e+00 : f32
    %0 = vector.broadcast %cst : f32 to vector<8x256xf32>
    %cst_0 = arith.constant 0.000000e+00 : f32
    %1 = vector.broadcast %cst_0 : f32 to vector<8x256xf32>
    %c0 = arith.constant 0 : index
    %c0_1 = arith.constant 0 : index
    %c0_2 = arith.constant 0 : index
    %2 = vector.load %arg1[%c0, %c0_1, %c0_2] : memref<4x8x256xf32, #tpu.memory_space<vmem>>, vector<1x1x256xf32>
    %3 = vector.shape_cast %2 : vector<1x1x256xf32> to vector<1x256xf32>
    %c0_3 = arith.constant 0 : index
    %c0_4 = arith.constant 0 : index
    %c0_5 = arith.constant 0 : index
    %4 = vector.load %arg2[%c0_3, %c0_4, %c0_5] : memref<4x8x256xf32, #tpu.memory_space<vmem>>, vector<1x1x256xf32>
    %5 = vector.shape_cast %4 : vector<1x1x256xf32> to vector<1x256xf32>
    %c0_6 = arith.constant 0 : index
    %c0_7 = arith.constant 0 : index
    %c0_8 = arith.constant 0 : index
    %6 = vector.load %arg3[%c0_6, %c0_7, %c0_8] : memref<8x8x256xbf16, #tpu.memory_space<vmem>>, vector<1x8x256xbf16>
    %7 = vector.shape_cast %6 : vector<1x8x256xbf16> to vector<8x256xbf16>
    %8 = arith.extf %7 : vector<8x256xbf16> to vector<8x256xf32>
    %c0_9 = arith.constant 0 : index
    %c0_10 = arith.constant 0 : index
    %c0_11 = arith.constant 0 : index
    %9 = vector.load %arg4[%c0_9, %c0_10, %c0_11] : memref<8x8x256xbf16, #tpu.memory_space<vmem>>, vector<1x8x256xbf16>
    %10 = vector.shape_cast %9 : vector<1x8x256xbf16> to vector<8x256xbf16>
    %11 = arith.extf %10 : vector<8x256xbf16> to vector<8x256xf32>
    %12 = vector.broadcast %3 : vector<1x256xf32> to vector<8x256xf32>
    %13 = arith.mulf %12, %8 : vector<8x256xf32>
    %14 = vector.broadcast %5 : vector<1x256xf32> to vector<8x256xf32>
    %15 = arith.mulf %14, %11 : vector<8x256xf32>
    %16 = arith.subf %13, %15 : vector<8x256xf32>
    %17 = arith.addf %0, %16 : vector<8x256xf32>
    %18 = vector.broadcast %3 : vector<1x256xf32> to vector<8x256xf32>
    %19 = arith.mulf %18, %11 : vector<8x256xf32>
    %20 = vector.broadcast %5 : vector<1x256xf32> to vector<8x256xf32>
    %21 = arith.mulf %20, %8 : vector<8x256xf32>
    %22 = arith.addf %19, %21 : vector<8x256xf32>
    %23 = arith.addf %1, %22 : vector<8x256xf32>
    %c0_12 = arith.constant 0 : index
    %c1 = arith.constant 1 : index
    %c0_13 = arith.constant 0 : index
    %24 = vector.load %arg1[%c0_12, %c1, %c0_13] : memref<4x8x256xf32, #tpu.memory_space<vmem>>, vector<1x1x256xf32>
    %25 = vector.shape_cast %24 : vector<1x1x256xf32> to vector<1x256xf32>
    %c0_14 = arith.constant 0 : index
    %c1_15 = arith.constant 1 : index
    %c0_16 = arith.constant 0 : index
    %26 = vector.load %arg2[%c0_14, %c1_15, %c0_16] : memref<4x8x256xf32, #tpu.memory_space<vmem>>, vector<1x1x256xf32>
    %27 = vector.shape_cast %26 : vector<1x1x256xf32> to vector<1x256xf32>
    %c1_17 = arith.constant 1 : index
    %c0_18 = arith.constant 0 : index
    %c0_19 = arith.constant 0 : index
    %28 = vector.load %arg3[%c1_17, %c0_18, %c0_19] : memref<8x8x256xbf16, #tpu.memory_space<vmem>>, vector<1x8x256xbf16>
    %29 = vector.shape_cast %28 : vector<1x8x256xbf16> to vector<8x256xbf16>
    %30 = arith.extf %29 : vector<8x256xbf16> to vector<8x256xf32>
    %c1_20 = arith.constant 1 : index
    %c0_21 = arith.constant 0 : index
    %c0_22 = arith.constant 0 : index
    %31 = vector.load %arg4[%c1_20, %c0_21, %c0_22] : memref<8x8x256xbf16, #tpu.memory_space<vmem>>, vector<1x8x256xbf16>
    %32 = vector.shape_cast %31 : vector<1x8x256xbf16> to vector<8x256xbf16>
    %33 = arith.extf %32 : vector<8x256xbf16> to vector<8x256xf32>
    %34 = vector.broadcast %25 : vector<1x256xf32> to vector<8x256xf32>
    %35 = arith.mulf %34, %30 : vector<8x256xf32>
    %36 = vector.broadcast %27 : vector<1x256xf32> to vector<8x256xf32>
    %37 = arith.mulf %36, %33 : vector<8x256xf32>
    %38 = arith.subf %35, %37 : vector<8x256xf32>
    %39 = arith.addf %17, %38 : vector<8x256xf32>
    %40 = vector.broadcast %25 : vector<1x256xf32> to vector<8x256xf32>
    %41 = arith.mulf %40, %33 : vector<8x256xf32>
    %42 = vector.broadcast %27 : vector<1x256xf32> to vector<8x256xf32>
    %43 = arith.mulf %42, %30 : vector<8x256xf32>
    %44 = arith.addf %41, %43 : vector<8x256xf32>
    %45 = arith.addf %23, %44 : vector<8x256xf32>
    %c0_23 = arith.constant 0 : index
    %c2 = arith.constant 2 : index
    %c0_24 = arith.constant 0 : index
    %46 = vector.load %arg1[%c0_23, %c2, %c0_24] : memref<4x8x256xf32, #tpu.memory_space<vmem>>, vector<1x1x256xf32>
    %47 = vector.shape_cast %46 : vector<1x1x256xf32> to vector<1x256xf32>
    %c0_25 = arith.constant 0 : index
    %c2_26 = arith.constant 2 : index
    %c0_27 = arith.constant 0 : index
    %48 = vector.load %arg2[%c0_25, %c2_26, %c0_27] : memref<4x8x256xf32, #tpu.memory_space<vmem>>, vector<1x1x256xf32>
    %49 = vector.shape_cast %48 : vector<1x1x256xf32> to vector<1x256xf32>
    %c2_28 = arith.constant 2 : index
    %c0_29 = arith.constant 0 : index
    %c0_30 = arith.constant 0 : index
    %50 = vector.load %arg3[%c2_28, %c0_29, %c0_30] : memref<8x8x256xbf16, #tpu.memory_space<vmem>>, vector<1x8x256xbf16>
    %51 = vector.shape_cast %50 : vector<1x8x256xbf16> to vector<8x256xbf16>
    %52 = arith.extf %51 : vector<8x256xbf16> to vector<8x256xf32>
    %c2_31 = arith.constant 2 : index
    %c0_32 = arith.constant 0 : index
    %c0_33 = arith.constant 0 : index
    %53 = vector.load %arg4[%c2_31, %c0_32, %c0_33] : memref<8x8x256xbf16, #tpu.memory_space<vmem>>, vector<1x8x256xbf16>
    %54 = vector.shape_cast %53 : vector<1x8x256xbf16> to vector<8x256xbf16>
    %55 = arith.extf %54 : vector<8x256xbf16> to vector<8x256xf32>
    %56 = vector.broadcast %47 : vector<1x256xf32> to vector<8x256xf32>
    %57 = arith.mulf %56, %52 : vector<8x256xf32>
    %58 = vector.broadcast %49 : vector<1x256xf32> to vector<8x256xf32>
    %59 = arith.mulf %58, %55 : vector<8x256xf32>
    %60 = arith.subf %57, %59 : vector<8x256xf32>
    %61 = arith.addf %39, %60 : vector<8x256xf32>
    %62 = vector.broadcast %47 : vector<1x256xf32> to vector<8x256xf32>
    %63 = arith.mulf %62, %55 : vector<8x256xf32>
    %64 = vector.broadcast %49 : vector<1x256xf32> to vector<8x256xf32>
    %65 = arith.mulf %64, %52 : vector<8x256xf32>
    %66 = arith.addf %63, %65 : vector<8x256xf32>
    %67 = arith.addf %45, %66 : vector<8x256xf32>
    %c0_34 = arith.constant 0 : index
    %c3 = arith.constant 3 : index
    %c0_35 = arith.constant 0 : index
    %68 = vector.load %arg1[%c0_34, %c3, %c0_35] : memref<4x8x256xf32, #tpu.memory_space<vmem>>, vector<1x1x256xf32>
    %69 = vector.shape_cast %68 : vector<1x1x256xf32> to vector<1x256xf32>
    %c0_36 = arith.constant 0 : index
    %c3_37 = arith.constant 3 : index
    %c0_38 = arith.constant 0 : index
    %70 = vector.load %arg2[%c0_36, %c3_37, %c0_38] : memref<4x8x256xf32, #tpu.memory_space<vmem>>, vector<1x1x256xf32>
    %71 = vector.shape_cast %70 : vector<1x1x256xf32> to vector<1x256xf32>
    %c3_39 = arith.constant 3 : index
    %c0_40 = arith.constant 0 : index
    %c0_41 = arith.constant 0 : index
    %72 = vector.load %arg3[%c3_39, %c0_40, %c0_41] : memref<8x8x256xbf16, #tpu.memory_space<vmem>>, vector<1x8x256xbf16>
    %73 = vector.shape_cast %72 : vector<1x8x256xbf16> to vector<8x256xbf16>
    %74 = arith.extf %73 : vector<8x256xbf16> to vector<8x256xf32>
    %c3_42 = arith.constant 3 : index
    %c0_43 = arith.constant 0 : index
    %c0_44 = arith.constant 0 : index
    %75 = vector.load %arg4[%c3_42, %c0_43, %c0_44] : memref<8x8x256xbf16, #tpu.memory_space<vmem>>, vector<1x8x256xbf16>
    %76 = vector.shape_cast %75 : vector<1x8x256xbf16> to vector<8x256xbf16>
    %77 = arith.extf %76 : vector<8x256xbf16> to vector<8x256xf32>
    %78 = vector.broadcast %69 : vector<1x256xf32> to vector<8x256xf32>
    %79 = arith.mulf %78, %74 : vector<8x256xf32>
    %80 = vector.broadcast %71 : vector<1x256xf32> to vector<8x256xf32>
    %81 = arith.mulf %80, %77 : vector<8x256xf32>
    %82 = arith.subf %79, %81 : vector<8x256xf32>
    %83 = arith.addf %61, %82 : vector<8x256xf32>
    %84 = vector.broadcast %69 : vector<1x256xf32> to vector<8x256xf32>
    %85 = arith.mulf %84, %77 : vector<8x256xf32>
    %86 = vector.broadcast %71 : vector<1x256xf32> to vector<8x256xf32>
    %87 = arith.mulf %86, %74 : vector<8x256xf32>
    %88 = arith.addf %85, %87 : vector<8x256xf32>
    %89 = arith.addf %67, %88 : vector<8x256xf32>
    %c0_45 = arith.constant 0 : index
    %c4 = arith.constant 4 : index
    %c0_46 = arith.constant 0 : index
    %90 = vector.load %arg1[%c0_45, %c4, %c0_46] : memref<4x8x256xf32, #tpu.memory_space<vmem>>, vector<1x1x256xf32>
    %91 = vector.shape_cast %90 : vector<1x1x256xf32> to vector<1x256xf32>
    %c0_47 = arith.constant 0 : index
    %c4_48 = arith.constant 4 : index
    %c0_49 = arith.constant 0 : index
    %92 = vector.load %arg2[%c0_47, %c4_48, %c0_49] : memref<4x8x256xf32, #tpu.memory_space<vmem>>, vector<1x1x256xf32>
    %93 = vector.shape_cast %92 : vector<1x1x256xf32> to vector<1x256xf32>
    %c4_50 = arith.constant 4 : index
    %c0_51 = arith.constant 0 : index
    %c0_52 = arith.constant 0 : index
    %94 = vector.load %arg3[%c4_50, %c0_51, %c0_52] : memref<8x8x256xbf16, #tpu.memory_space<vmem>>, vector<1x8x256xbf16>
    %95 = vector.shape_cast %94 : vector<1x8x256xbf16> to vector<8x256xbf16>
    %96 = arith.extf %95 : vector<8x256xbf16> to vector<8x256xf32>
    %c4_53 = arith.constant 4 : index
    %c0_54 = arith.constant 0 : index
    %c0_55 = arith.constant 0 : index
    %97 = vector.load %arg4[%c4_53, %c0_54, %c0_55] : memref<8x8x256xbf16, #tpu.memory_space<vmem>>, vector<1x8x256xbf16>
    %98 = vector.shape_cast %97 : vector<1x8x256xbf16> to vector<8x256xbf16>
    %99 = arith.extf %98 : vector<8x256xbf16> to vector<8x256xf32>
    %100 = vector.broadcast %91 : vector<1x256xf32> to vector<8x256xf32>
    %101 = arith.mulf %100, %96 : vector<8x256xf32>
    %102 = vector.broadcast %93 : vector<1x256xf32> to vector<8x256xf32>
    %103 = arith.mulf %102, %99 : vector<8x256xf32>
    %104 = arith.subf %101, %103 : vector<8x256xf32>
    %105 = arith.addf %83, %104 : vector<8x256xf32>
    %106 = vector.broadcast %91 : vector<1x256xf32> to vector<8x256xf32>
    %107 = arith.mulf %106, %99 : vector<8x256xf32>
    %108 = vector.broadcast %93 : vector<1x256xf32> to vector<8x256xf32>
    %109 = arith.mulf %108, %96 : vector<8x256xf32>
    %110 = arith.addf %107, %109 : vector<8x256xf32>
    %111 = arith.addf %89, %110 : vector<8x256xf32>
    %c0_56 = arith.constant 0 : index
    %c5 = arith.constant 5 : index
    %c0_57 = arith.constant 0 : index
    %112 = vector.load %arg1[%c0_56, %c5, %c0_57] : memref<4x8x256xf32, #tpu.memory_space<vmem>>, vector<1x1x256xf32>
    %113 = vector.shape_cast %112 : vector<1x1x256xf32> to vector<1x256xf32>
    %c0_58 = arith.constant 0 : index
    %c5_59 = arith.constant 5 : index
    %c0_60 = arith.constant 0 : index
    %114 = vector.load %arg2[%c0_58, %c5_59, %c0_60] : memref<4x8x256xf32, #tpu.memory_space<vmem>>, vector<1x1x256xf32>
    %115 = vector.shape_cast %114 : vector<1x1x256xf32> to vector<1x256xf32>
    %c5_61 = arith.constant 5 : index
    %c0_62 = arith.constant 0 : index
    %c0_63 = arith.constant 0 : index
    %116 = vector.load %arg3[%c5_61, %c0_62, %c0_63] : memref<8x8x256xbf16, #tpu.memory_space<vmem>>, vector<1x8x256xbf16>
    %117 = vector.shape_cast %116 : vector<1x8x256xbf16> to vector<8x256xbf16>
    %118 = arith.extf %117 : vector<8x256xbf16> to vector<8x256xf32>
    %c5_64 = arith.constant 5 : index
    %c0_65 = arith.constant 0 : index
    %c0_66 = arith.constant 0 : index
    %119 = vector.load %arg4[%c5_64, %c0_65, %c0_66] : memref<8x8x256xbf16, #tpu.memory_space<vmem>>, vector<1x8x256xbf16>
    %120 = vector.shape_cast %119 : vector<1x8x256xbf16> to vector<8x256xbf16>
    %121 = arith.extf %120 : vector<8x256xbf16> to vector<8x256xf32>
    %122 = vector.broadcast %113 : vector<1x256xf32> to vector<8x256xf32>
    %123 = arith.mulf %122, %118 : vector<8x256xf32>
    %124 = vector.broadcast %115 : vector<1x256xf32> to vector<8x256xf32>
    %125 = arith.mulf %124, %121 : vector<8x256xf32>
    %126 = arith.subf %123, %125 : vector<8x256xf32>
    %127 = arith.addf %105, %126 : vector<8x256xf32>
    %128 = vector.broadcast %113 : vector<1x256xf32> to vector<8x256xf32>
    %129 = arith.mulf %128, %121 : vector<8x256xf32>
    %130 = vector.broadcast %115 : vector<1x256xf32> to vector<8x256xf32>
    %131 = arith.mulf %130, %118 : vector<8x256xf32>
    %132 = arith.addf %129, %131 : vector<8x256xf32>
    %133 = arith.addf %111, %132 : vector<8x256xf32>
    %c0_67 = arith.constant 0 : index
    %c6 = arith.constant 6 : index
    %c0_68 = arith.constant 0 : index
    %134 = vector.load %arg1[%c0_67, %c6, %c0_68] : memref<4x8x256xf32, #tpu.memory_space<vmem>>, vector<1x1x256xf32>
    %135 = vector.shape_cast %134 : vector<1x1x256xf32> to vector<1x256xf32>
    %c0_69 = arith.constant 0 : index
    %c6_70 = arith.constant 6 : index
    %c0_71 = arith.constant 0 : index
    %136 = vector.load %arg2[%c0_69, %c6_70, %c0_71] : memref<4x8x256xf32, #tpu.memory_space<vmem>>, vector<1x1x256xf32>
    %137 = vector.shape_cast %136 : vector<1x1x256xf32> to vector<1x256xf32>
    %c6_72 = arith.constant 6 : index
    %c0_73 = arith.constant 0 : index
    %c0_74 = arith.constant 0 : index
    %138 = vector.load %arg3[%c6_72, %c0_73, %c0_74] : memref<8x8x256xbf16, #tpu.memory_space<vmem>>, vector<1x8x256xbf16>
    %139 = vector.shape_cast %138 : vector<1x8x256xbf16> to vector<8x256xbf16>
    %140 = arith.extf %139 : vector<8x256xbf16> to vector<8x256xf32>
    %c6_75 = arith.constant 6 : index
    %c0_76 = arith.constant 0 : index
    %c0_77 = arith.constant 0 : index
    %141 = vector.load %arg4[%c6_75, %c0_76, %c0_77] : memref<8x8x256xbf16, #tpu.memory_space<vmem>>, vector<1x8x256xbf16>
    %142 = vector.shape_cast %141 : vector<1x8x256xbf16> to vector<8x256xbf16>
    %143 = arith.extf %142 : vector<8x256xbf16> to vector<8x256xf32>
    %144 = vector.broadcast %135 : vector<1x256xf32> to vector<8x256xf32>
    %145 = arith.mulf %144, %140 : vector<8x256xf32>
    %146 = vector.broadcast %137 : vector<1x256xf32> to vector<8x256xf32>
    %147 = arith.mulf %146, %143 : vector<8x256xf32>
    %148 = arith.subf %145, %147 : vector<8x256xf32>
    %149 = arith.addf %127, %148 : vector<8x256xf32>
    %150 = vector.broadcast %135 : vector<1x256xf32> to vector<8x256xf32>
    %151 = arith.mulf %150, %143 : vector<8x256xf32>
    %152 = vector.broadcast %137 : vector<1x256xf32> to vector<8x256xf32>
    %153 = arith.mulf %152, %140 : vector<8x256xf32>
    %154 = arith.addf %151, %153 : vector<8x256xf32>
    %155 = arith.addf %133, %154 : vector<8x256xf32>
    %c0_78 = arith.constant 0 : index
    %c7 = arith.constant 7 : index
    %c0_79 = arith.constant 0 : index
    %156 = vector.load %arg1[%c0_78, %c7, %c0_79] : memref<4x8x256xf32, #tpu.memory_space<vmem>>, vector<1x1x256xf32>
    %157 = vector.shape_cast %156 : vector<1x1x256xf32> to vector<1x256xf32>
    %c0_80 = arith.constant 0 : index
    %c7_81 = arith.constant 7 : index
    %c0_82 = arith.constant 0 : index
    %158 = vector.load %arg2[%c0_80, %c7_81, %c0_82] : memref<4x8x256xf32, #tpu.memory_space<vmem>>, vector<1x1x256xf32>
    %159 = vector.shape_cast %158 : vector<1x1x256xf32> to vector<1x256xf32>
    %c7_83 = arith.constant 7 : index
    %c0_84 = arith.constant 0 : index
    %c0_85 = arith.constant 0 : index
    %160 = vector.load %arg3[%c7_83, %c0_84, %c0_85] : memref<8x8x256xbf16, #tpu.memory_space<vmem>>, vector<1x8x256xbf16>
    %161 = vector.shape_cast %160 : vector<1x8x256xbf16> to vector<8x256xbf16>
    %162 = arith.extf %161 : vector<8x256xbf16> to vector<8x256xf32>
    %c7_86 = arith.constant 7 : index
    %c0_87 = arith.constant 0 : index
    %c0_88 = arith.constant 0 : index
    %163 = vector.load %arg4[%c7_86, %c0_87, %c0_88] : memref<8x8x256xbf16, #tpu.memory_space<vmem>>, vector<1x8x256xbf16>
    %164 = vector.shape_cast %163 : vector<1x8x256xbf16> to vector<8x256xbf16>
    %165 = arith.extf %164 : vector<8x256xbf16> to vector<8x256xf32>
    %166 = vector.broadcast %157 : vector<1x256xf32> to vector<8x256xf32>
    %167 = arith.mulf %166, %162 : vector<8x256xf32>
    %168 = vector.broadcast %159 : vector<1x256xf32> to vector<8x256xf32>
    %169 = arith.mulf %168, %165 : vector<8x256xf32>
    %170 = arith.subf %167, %169 : vector<8x256xf32>
    %171 = arith.addf %149, %170 : vector<8x256xf32>
    %172 = vector.broadcast %157 : vector<1x256xf32> to vector<8x256xf32>
    %173 = arith.mulf %172, %165 : vector<8x256xf32>
    %174 = vector.broadcast %159 : vector<1x256xf32> to vector<8x256xf32>
    %175 = arith.mulf %174, %162 : vector<8x256xf32>
    %176 = arith.addf %173, %175 : vector<8x256xf32>
    %177 = arith.addf %155, %176 : vector<8x256xf32>
    %c0_89 = arith.constant 0 : index
    %c0_90 = arith.constant 0 : index
    %c0_91 = arith.constant 0 : index
    %178 = vector.load %arg5[%c0_89, %c0_90, %c0_91] : memref<4x8x256xf32, #tpu.memory_space<vmem>>, vector<1x8x256xf32>
    %179 = vector.shape_cast %178 : vector<1x8x256xf32> to vector<8x256xf32>
    %180 = vector.shape_cast %171 : vector<8x256xf32> to vector<1x8x256xf32>
    tpu.vector_store %arg5[%c0_89, %c0_90, %c0_91], %180 {strides = array<i32>} : memref<4x8x256xf32, #tpu.memory_space<vmem>>, vector<1x8x256xf32>,
    %c0_92 = arith.constant 0 : index
    %c0_93 = arith.constant 0 : index
    %c0_94 = arith.constant 0 : index
    %181 = vector.load %arg6[%c0_92, %c0_93, %c0_94] : memref<4x8x256xf32, #tpu.memory_space<vmem>>, vector<1x8x256xf32>
    %182 = vector.shape_cast %181 : vector<1x8x256xf32> to vector<8x256xf32>
    %183 = vector.shape_cast %177 : vector<8x256xf32> to vector<1x8x256xf32>
    tpu.vector_store %arg6[%c0_92, %c0_93, %c0_94], %183 {strides = array<i32>} : memref<4x8x256xf32, #tpu.memory_space<vmem>>, vector<1x8x256xf32>,
    %cst_95 = arith.constant 0.000000e+00 : f32
    %184 = vector.broadcast %cst_95 : f32 to vector<8x256xf32>
    %cst_96 = arith.constant 0.000000e+00 : f32
    %185 = vector.broadcast %cst_96 : f32 to vector<8x256xf32>
    %c1_97 = arith.constant 1 : index
    %c0_98 = arith.constant 0 : index
    %c0_99 = arith.constant 0 : index
    %186 = vector.load %arg1[%c1_97, %c0_98, %c0_99] : memref<4x8x256xf32, #tpu.memory_space<vmem>>, vector<1x1x256xf32>
    %187 = vector.shape_cast %186 : vector<1x1x256xf32> to vector<1x256xf32>
    %c1_100 = arith.constant 1 : index
    %c0_101 = arith.constant 0 : index
    %c0_102 = arith.constant 0 : index
    %188 = vector.load %arg2[%c1_100, %c0_101, %c0_102] : memref<4x8x256xf32, #tpu.memory_space<vmem>>, vector<1x1x256xf32>
    %189 = vector.shape_cast %188 : vector<1x1x256xf32> to vector<1x256xf32>
    %c0_103 = arith.constant 0 : index
    %c0_104 = arith.constant 0 : index
    %c0_105 = arith.constant 0 : index
    %190 = vector.load %arg3[%c0_103, %c0_104, %c0_105] : memref<8x8x256xbf16, #tpu.memory_space<vmem>>, vector<1x8x256xbf16>
    %191 = vector.shape_cast %190 : vector<1x8x256xbf16> to vector<8x256xbf16>
    %192 = arith.extf %191 : vector<8x256xbf16> to vector<8x256xf32>
    %c0_106 = arith.constant 0 : index
    %c0_107 = arith.constant 0 : index
    %c0_108 = arith.constant 0 : index
    %193 = vector.load %arg4[%c0_106, %c0_107, %c0_108] : memref<8x8x256xbf16, #tpu.memory_space<vmem>>, vector<1x8x256xbf16>
    %194 = vector.shape_cast %193 : vector<1x8x256xbf16> to vector<8x256xbf16>
    %195 = arith.extf %194 : vector<8x256xbf16> to vector<8x256xf32>
    %196 = vector.broadcast %187 : vector<1x256xf32> to vector<8x256xf32>
    %197 = arith.mulf %196, %192 : vector<8x256xf32>
    %198 = vector.broadcast %189 : vector<1x256xf32> to vector<8x256xf32>
    %199 = arith.mulf %198, %195 : vector<8x256xf32>
    %200 = arith.subf %197, %199 : vector<8x256xf32>
    %201 = arith.addf %184, %200 : vector<8x256xf32>
    %202 = vector.broadcast %187 : vector<1x256xf32> to vector<8x256xf32>
    %203 = arith.mulf %202, %195 : vector<8x256xf32>
    %204 = vector.broadcast %189 : vector<1x256xf32> to vector<8x256xf32>
    %205 = arith.mulf %204, %192 : vector<8x256xf32>
    %206 = arith.addf %203, %205 : vector<8x256xf32>
    %207 = arith.addf %185, %206 : vector<8x256xf32>
    %c1_109 = arith.constant 1 : index
    %c1_110 = arith.constant 1 : index
    %c0_111 = arith.constant 0 : index
    %208 = vector.load %arg1[%c1_109, %c1_110, %c0_111] : memref<4x8x256xf32, #tpu.memory_space<vmem>>, vector<1x1x256xf32>
    %209 = vector.shape_cast %208 : vector<1x1x256xf32> to vector<1x256xf32>
    %c1_112 = arith.constant 1 : index
    %c1_113 = arith.constant 1 : index
    %c0_114 = arith.constant 0 : index
    %210 = vector.load %arg2[%c1_112, %c1_113, %c0_114] : memref<4x8x256xf32, #tpu.memory_space<vmem>>, vector<1x1x256xf32>
    %211 = vector.shape_cast %210 : vector<1x1x256xf32> to vector<1x256xf32>
    %c1_115 = arith.constant 1 : index
    %c0_116 = arith.constant 0 : index
    %c0_117 = arith.constant 0 : index
    %212 = vector.load %arg3[%c1_115, %c0_116, %c0_117] : memref<8x8x256xbf16, #tpu.memory_space<vmem>>, vector<1x8x256xbf16>
    %213 = vector.shape_cast %212 : vector<1x8x256xbf16> to vector<8x256xbf16>
    %214 = arith.extf %213 : vector<8x256xbf16> to vector<8x256xf32>
    %c1_118 = arith.constant 1 : index
    %c0_119 = arith.constant 0 : index
    %c0_120 = arith.constant 0 : index
    %215 = vector.load %arg4[%c1_118, %c0_119, %c0_120] : memref<8x8x256xbf16, #tpu.memory_space<vmem>>, vector<1x8x256xbf16>
    %216 = vector.shape_cast %215 : vector<1x8x256xbf16> to vector<8x256xbf16>
    %217 = arith.extf %216 : vector<8x256xbf16> to vector<8x256xf32>
    %218 = vector.broadcast %209 : vector<1x256xf32> to vector<8x256xf32>
    %219 = arith.mulf %218, %214 : vector<8x256xf32>
    %220 = vector.broadcast %211 : vector<1x256xf32> to vector<8x256xf32>
    %221 = arith.mulf %220, %217 : vector<8x256xf32>
    %222 = arith.subf %219, %221 : vector<8x256xf32>
    %223 = arith.addf %201, %222 : vector<8x256xf32>
    %224 = vector.broadcast %209 : vector<1x256xf32> to vector<8x256xf32>
    %225 = arith.mulf %224, %217 : vector<8x256xf32>
    %226 = vector.broadcast %211 : vector<1x256xf32> to vector<8x256xf32>
    %227 = arith.mulf %226, %214 : vector<8x256xf32>
    %228 = arith.addf %225, %227 : vector<8x256xf32>
    %229 = arith.addf %207, %228 : vector<8x256xf32>
    %c1_121 = arith.constant 1 : index
    %c2_122 = arith.constant 2 : index
    %c0_123 = arith.constant 0 : index
    %230 = vector.load %arg1[%c1_121, %c2_122, %c0_123] : memref<4x8x256xf32, #tpu.memory_space<vmem>>, vector<1x1x256xf32>
    %231 = vector.shape_cast %230 : vector<1x1x256xf32> to vector<1x256xf32>
    %c1_124 = arith.constant 1 : index
    %c2_125 = arith.constant 2 : index
    %c0_126 = arith.constant 0 : index
    %232 = vector.load %arg2[%c1_124, %c2_125, %c0_126] : memref<4x8x256xf32, #tpu.memory_space<vmem>>, vector<1x1x256xf32>
    %233 = vector.shape_cast %232 : vector<1x1x256xf32> to vector<1x256xf32>
    %c2_127 = arith.constant 2 : index
    %c0_128 = arith.constant 0 : index
    %c0_129 = arith.constant 0 : index
    %234 = vector.load %arg3[%c2_127, %c0_128, %c0_129] : memref<8x8x256xbf16, #tpu.memory_space<vmem>>, vector<1x8x256xbf16>
    %235 = vector.shape_cast %234 : vector<1x8x256xbf16> to vector<8x256xbf16>
    %236 = arith.extf %235 : vector<8x256xbf16> to vector<8x256xf32>
    %c2_130 = arith.constant 2 : index
    %c0_131 = arith.constant 0 : index
    %c0_132 = arith.constant 0 : index
    %237 = vector.load %arg4[%c2_130, %c0_131, %c0_132] : memref<8x8x256xbf16, #tpu.memory_space<vmem>>, vector<1x8x256xbf16>
    %238 = vector.shape_cast %237 : vector<1x8x256xbf16> to vector<8x256xbf16>
    %239 = arith.extf %238 : vector<8x256xbf16> to vector<8x256xf32>
    %240 = vector.broadcast %231 : vector<1x256xf32> to vector<8x256xf32>
    %241 = arith.mulf %240, %236 : vector<8x256xf32>
    %242 = vector.broadcast %233 : vector<1x256xf32> to vector<8x256xf32>
    %243 = arith.mulf %242, %239 : vector<8x256xf32>
    %244 = arith.subf %241, %243 : vector<8x256xf32>
    %245 = arith.addf %223, %244 : vector<8x256xf32>
    %246 = vector.broadcast %231 : vector<1x256xf32> to vector<8x256xf32>
    %247 = arith.mulf %246, %239 : vector<8x256xf32>
    %248 = vector.broadcast %233 : vector<1x256xf32> to vector<8x256xf32>
    %249 = arith.mulf %248, %236 : vector<8x256xf32>
    %250 = arith.addf %247, %249 : vector<8x256xf32>
    %251 = arith.addf %229, %250 : vector<8x256xf32>
    %c1_133 = arith.constant 1 : index
    %c3_134 = arith.constant 3 : index
    %c0_135 = arith.constant 0 : index
    %252 = vector.load %arg1[%c1_133, %c3_134, %c0_135] : memref<4x8x256xf32, #tpu.memory_space<vmem>>, vector<1x1x256xf32>
    %253 = vector.shape_cast %252 : vector<1x1x256xf32> to vector<1x256xf32>
    %c1_136 = arith.constant 1 : index
    %c3_137 = arith.constant 3 : index
    %c0_138 = arith.constant 0 : index
    %254 = vector.load %arg2[%c1_136, %c3_137, %c0_138] : memref<4x8x256xf32, #tpu.memory_space<vmem>>, vector<1x1x256xf32>
    %255 = vector.shape_cast %254 : vector<1x1x256xf32> to vector<1x256xf32>
    %c3_139 = arith.constant 3 : index
    %c0_140 = arith.constant 0 : index
    %c0_141 = arith.constant 0 : index
    %256 = vector.load %arg3[%c3_139, %c0_140, %c0_141] : memref<8x8x256xbf16, #tpu.memory_space<vmem>>, vector<1x8x256xbf16>
    %257 = vector.shape_cast %256 : vector<1x8x256xbf16> to vector<8x256xbf16>
    %258 = arith.extf %257 : vector<8x256xbf16> to vector<8x256xf32>
    %c3_142 = arith.constant 3 : index
    %c0_143 = arith.constant 0 : index
    %c0_144 = arith.constant 0 : index
    %259 = vector.load %arg4[%c3_142, %c0_143, %c0_144] : memref<8x8x256xbf16, #tpu.memory_space<vmem>>, vector<1x8x256xbf16>
    %260 = vector.shape_cast %259 : vector<1x8x256xbf16> to vector<8x256xbf16>
    %261 = arith.extf %260 : vector<8x256xbf16> to vector<8x256xf32>
    %262 = vector.broadcast %253 : vector<1x256xf32> to vector<8x256xf32>
    %263 = arith.mulf %262, %258 : vector<8x256xf32>
    %264 = vector.broadcast %255 : vector<1x256xf32> to vector<8x256xf32>
    %265 = arith.mulf %264, %261 : vector<8x256xf32>
    %266 = arith.subf %263, %265 : vector<8x256xf32>
    %267 = arith.addf %245, %266 : vector<8x256xf32>
    %268 = vector.broadcast %253 : vector<1x256xf32> to vector<8x256xf32>
    %269 = arith.mulf %268, %261 : vector<8x256xf32>
    %270 = vector.broadcast %255 : vector<1x256xf32> to vector<8x256xf32>
    %271 = arith.mulf %270, %258 : vector<8x256xf32>
    %272 = arith.addf %269, %271 : vector<8x256xf32>
    %273 = arith.addf %251, %272 : vector<8x256xf32>
    %c1_145 = arith.constant 1 : index
    %c4_146 = arith.constant 4 : index
    %c0_147 = arith.constant 0 : index
    %274 = vector.load %arg1[%c1_145, %c4_146, %c0_147] : memref<4x8x256xf32, #tpu.memory_space<vmem>>, vector<1x1x256xf32>
    %275 = vector.shape_cast %274 : vector<1x1x256xf32> to vector<1x256xf32>
    %c1_148 = arith.constant 1 : index
    %c4_149 = arith.constant 4 : index
    %c0_150 = arith.constant 0 : index
    %276 = vector.load %arg2[%c1_148, %c4_149, %c0_150] : memref<4x8x256xf32, #tpu.memory_space<vmem>>, vector<1x1x256xf32>
    %277 = vector.shape_cast %276 : vector<1x1x256xf32> to vector<1x256xf32>
    %c4_151 = arith.constant 4 : index
    %c0_152 = arith.constant 0 : index
    %c0_153 = arith.constant 0 : index
    %278 = vector.load %arg3[%c4_151, %c0_152, %c0_153] : memref<8x8x256xbf16, #tpu.memory_space<vmem>>, vector<1x8x256xbf16>
    %279 = vector.shape_cast %278 : vector<1x8x256xbf16> to vector<8x256xbf16>
    %280 = arith.extf %279 : vector<8x256xbf16> to vector<8x256xf32>
    %c4_154 = arith.constant 4 : index
    %c0_155 = arith.constant 0 : index
    %c0_156 = arith.constant 0 : index
    %281 = vector.load %arg4[%c4_154, %c0_155, %c0_156] : memref<8x8x256xbf16, #tpu.memory_space<vmem>>, vector<1x8x256xbf16>
    %282 = vector.shape_cast %281 : vector<1x8x256xbf16> to vector<8x256xbf16>
    %283 = arith.extf %282 : vector<8x256xbf16> to vector<8x256xf32>
    %284 = vector.broadcast %275 : vector<1x256xf32> to vector<8x256xf32>
    %285 = arith.mulf %284, %280 : vector<8x256xf32>
    %286 = vector.broadcast %277 : vector<1x256xf32> to vector<8x256xf32>
    %287 = arith.mulf %286, %283 : vector<8x256xf32>
    %288 = arith.subf %285, %287 : vector<8x256xf32>
    %289 = arith.addf %267, %288 : vector<8x256xf32>
    %290 = vector.broadcast %275 : vector<1x256xf32> to vector<8x256xf32>
    %291 = arith.mulf %290, %283 : vector<8x256xf32>
    %292 = vector.broadcast %277 : vector<1x256xf32> to vector<8x256xf32>
    %293 = arith.mulf %292, %280 : vector<8x256xf32>
    %294 = arith.addf %291, %293 : vector<8x256xf32>
    %295 = arith.addf %273, %294 : vector<8x256xf32>
    %c1_157 = arith.constant 1 : index
    %c5_158 = arith.constant 5 : index
    %c0_159 = arith.constant 0 : index
    %296 = vector.load %arg1[%c1_157, %c5_158, %c0_159] : memref<4x8x256xf32, #tpu.memory_space<vmem>>, vector<1x1x256xf32>
    %297 = vector.shape_cast %296 : vector<1x1x256xf32> to vector<1x256xf32>
    %c1_160 = arith.constant 1 : index
    %c5_161 = arith.constant 5 : index
    %c0_162 = arith.constant 0 : index
    %298 = vector.load %arg2[%c1_160, %c5_161, %c0_162] : memref<4x8x256xf32, #tpu.memory_space<vmem>>, vector<1x1x256xf32>
    %299 = vector.shape_cast %298 : vector<1x1x256xf32> to vector<1x256xf32>
    %c5_163 = arith.constant 5 : index
    %c0_164 = arith.constant 0 : index
    %c0_165 = arith.constant 0 : index
    %300 = vector.load %arg3[%c5_163, %c0_164, %c0_165] : memref<8x8x256xbf16, #tpu.memory_space<vmem>>, vector<1x8x256xbf16>
    %301 = vector.shape_cast %300 : vector<1x8x256xbf16> to vector<8x256xbf16>
    %302 = arith.extf %301 : vector<8x256xbf16> to vector<8x256xf32>
    %c5_166 = arith.constant 5 : index
    %c0_167 = arith.constant 0 : index
    %c0_168 = arith.constant 0 : index
    %303 = vector.load %arg4[%c5_166, %c0_167, %c0_168] : memref<8x8x256xbf16, #tpu.memory_space<vmem>>, vector<1x8x256xbf16>
    %304 = vector.shape_cast %303 : vector<1x8x256xbf16> to vector<8x256xbf16>
    %305 = arith.extf %304 : vector<8x256xbf16> to vector<8x256xf32>
    %306 = vector.broadcast %297 : vector<1x256xf32> to vector<8x256xf32>
    %307 = arith.mulf %306, %302 : vector<8x256xf32>
    %308 = vector.broadcast %299 : vector<1x256xf32> to vector<8x256xf32>
    %309 = arith.mulf %308, %305 : vector<8x256xf32>
    %310 = arith.subf %307, %309 : vector<8x256xf32>
    %311 = arith.addf %289, %310 : vector<8x256xf32>
    %312 = vector.broadcast %297 : vector<1x256xf32> to vector<8x256xf32>
    %313 = arith.mulf %312, %305 : vector<8x256xf32>
    %314 = vector.broadcast %299 : vector<1x256xf32> to vector<8x256xf32>
    %315 = arith.mulf %314, %302 : vector<8x256xf32>
    %316 = arith.addf %313, %315 : vector<8x256xf32>
    %317 = arith.addf %295, %316 : vector<8x256xf32>
    %c1_169 = arith.constant 1 : index
    %c6_170 = arith.constant 6 : index
    %c0_171 = arith.constant 0 : index
    %318 = vector.load %arg1[%c1_169, %c6_170, %c0_171] : memref<4x8x256xf32, #tpu.memory_space<vmem>>, vector<1x1x256xf32>
    %319 = vector.shape_cast %318 : vector<1x1x256xf32> to vector<1x256xf32>
    %c1_172 = arith.constant 1 : index
    %c6_173 = arith.constant 6 : index
    %c0_174 = arith.constant 0 : index
    %320 = vector.load %arg2[%c1_172, %c6_173, %c0_174] : memref<4x8x256xf32, #tpu.memory_space<vmem>>, vector<1x1x256xf32>
    %321 = vector.shape_cast %320 : vector<1x1x256xf32> to vector<1x256xf32>
    %c6_175 = arith.constant 6 : index
    %c0_176 = arith.constant 0 : index
    %c0_177 = arith.constant 0 : index
    %322 = vector.load %arg3[%c6_175, %c0_176, %c0_177] : memref<8x8x256xbf16, #tpu.memory_space<vmem>>, vector<1x8x256xbf16>
    %323 = vector.shape_cast %322 : vector<1x8x256xbf16> to vector<8x256xbf16>
    %324 = arith.extf %323 : vector<8x256xbf16> to vector<8x256xf32>
    %c6_178 = arith.constant 6 : index
    %c0_179 = arith.constant 0 : index
    %c0_180 = arith.constant 0 : index
    %325 = vector.load %arg4[%c6_178, %c0_179, %c0_180] : memref<8x8x256xbf16, #tpu.memory_space<vmem>>, vector<1x8x256xbf16>
    %326 = vector.shape_cast %325 : vector<1x8x256xbf16> to vector<8x256xbf16>
    %327 = arith.extf %326 : vector<8x256xbf16> to vector<8x256xf32>
    %328 = vector.broadcast %319 : vector<1x256xf32> to vector<8x256xf32>
    %329 = arith.mulf %328, %324 : vector<8x256xf32>
    %330 = vector.broadcast %321 : vector<1x256xf32> to vector<8x256xf32>
    %331 = arith.mulf %330, %327 : vector<8x256xf32>
    %332 = arith.subf %329, %331 : vector<8x256xf32>
    %333 = arith.addf %311, %332 : vector<8x256xf32>
    %334 = vector.broadcast %319 : vector<1x256xf32> to vector<8x256xf32>
    %335 = arith.mulf %334, %327 : vector<8x256xf32>
    %336 = vector.broadcast %321 : vector<1x256xf32> to vector<8x256xf32>
    %337 = arith.mulf %336, %324 : vector<8x256xf32>
    %338 = arith.addf %335, %337 : vector<8x256xf32>
    %339 = arith.addf %317, %338 : vector<8x256xf32>
    %c1_181 = arith.constant 1 : index
    %c7_182 = arith.constant 7 : index
    %c0_183 = arith.constant 0 : index
    %340 = vector.load %arg1[%c1_181, %c7_182, %c0_183] : memref<4x8x256xf32, #tpu.memory_space<vmem>>, vector<1x1x256xf32>
    %341 = vector.shape_cast %340 : vector<1x1x256xf32> to vector<1x256xf32>
    %c1_184 = arith.constant 1 : index
    %c7_185 = arith.constant 7 : index
    %c0_186 = arith.constant 0 : index
    %342 = vector.load %arg2[%c1_184, %c7_185, %c0_186] : memref<4x8x256xf32, #tpu.memory_space<vmem>>, vector<1x1x256xf32>
    %343 = vector.shape_cast %342 : vector<1x1x256xf32> to vector<1x256xf32>
    %c7_187 = arith.constant 7 : index
    %c0_188 = arith.constant 0 : index
    %c0_189 = arith.constant 0 : index
    %344 = vector.load %arg3[%c7_187, %c0_188, %c0_189] : memref<8x8x256xbf16, #tpu.memory_space<vmem>>, vector<1x8x256xbf16>
    %345 = vector.shape_cast %344 : vector<1x8x256xbf16> to vector<8x256xbf16>
    %346 = arith.extf %345 : vector<8x256xbf16> to vector<8x256xf32>
    %c7_190 = arith.constant 7 : index
    %c0_191 = arith.constant 0 : index
    %c0_192 = arith.constant 0 : index
    %347 = vector.load %arg4[%c7_190, %c0_191, %c0_192] : memref<8x8x256xbf16, #tpu.memory_space<vmem>>, vector<1x8x256xbf16>
    %348 = vector.shape_cast %347 : vector<1x8x256xbf16> to vector<8x256xbf16>
    %349 = arith.extf %348 : vector<8x256xbf16> to vector<8x256xf32>
    %350 = vector.broadcast %341 : vector<1x256xf32> to vector<8x256xf32>
    %351 = arith.mulf %350, %346 : vector<8x256xf32>
    %352 = vector.broadcast %343 : vector<1x256xf32> to vector<8x256xf32>
    %353 = arith.mulf %352, %349 : vector<8x256xf32>
    %354 = arith.subf %351, %353 : vector<8x256xf32>
    %355 = arith.addf %333, %354 : vector<8x256xf32>
    %356 = vector.broadcast %341 : vector<1x256xf32> to vector<8x256xf32>
    %357 = arith.mulf %356, %349 : vector<8x256xf32>
    %358 = vector.broadcast %343 : vector<1x256xf32> to vector<8x256xf32>
    %359 = arith.mulf %358, %346 : vector<8x256xf32>
    %360 = arith.addf %357, %359 : vector<8x256xf32>
    %361 = arith.addf %339, %360 : vector<8x256xf32>
    %c1_193 = arith.constant 1 : index
    %c0_194 = arith.constant 0 : index
    %c0_195 = arith.constant 0 : index
    %362 = vector.load %arg5[%c1_193, %c0_194, %c0_195] : memref<4x8x256xf32, #tpu.memory_space<vmem>>, vector<1x8x256xf32>
    %363 = vector.shape_cast %362 : vector<1x8x256xf32> to vector<8x256xf32>
    %364 = vector.shape_cast %355 : vector<8x256xf32> to vector<1x8x256xf32>
    tpu.vector_store %arg5[%c1_193, %c0_194, %c0_195], %364 {strides = array<i32>} : memref<4x8x256xf32, #tpu.memory_space<vmem>>, vector<1x8x256xf32>,
    %c1_196 = arith.constant 1 : index
    %c0_197 = arith.constant 0 : index
    %c0_198 = arith.constant 0 : index
    %365 = vector.load %arg6[%c1_196, %c0_197, %c0_198] : memref<4x8x256xf32, #tpu.memory_space<vmem>>, vector<1x8x256xf32>
    %366 = vector.shape_cast %365 : vector<1x8x256xf32> to vector<8x256xf32>
    %367 = vector.shape_cast %361 : vector<8x256xf32> to vector<1x8x256xf32>
    tpu.vector_store %arg6[%c1_196, %c0_197, %c0_198], %367 {strides = array<i32>} : memref<4x8x256xf32, #tpu.memory_space<vmem>>, vector<1x8x256xf32>,
    %cst_199 = arith.constant 0.000000e+00 : f32
    %368 = vector.broadcast %cst_199 : f32 to vector<8x256xf32>
    %cst_200 = arith.constant 0.000000e+00 : f32
    %369 = vector.broadcast %cst_200 : f32 to vector<8x256xf32>
    %c2_201 = arith.constant 2 : index
    %c0_202 = arith.constant 0 : index
    %c0_203 = arith.constant 0 : index
    %370 = vector.load %arg1[%c2_201, %c0_202, %c0_203] : memref<4x8x256xf32, #tpu.memory_space<vmem>>, vector<1x1x256xf32>
    %371 = vector.shape_cast %370 : vector<1x1x256xf32> to vector<1x256xf32>
    %c2_204 = arith.constant 2 : index
    %c0_205 = arith.constant 0 : index
    %c0_206 = arith.constant 0 : index
    %372 = vector.load %arg2[%c2_204, %c0_205, %c0_206] : memref<4x8x256xf32, #tpu.memory_space<vmem>>, vector<1x1x256xf32>
    %373 = vector.shape_cast %372 : vector<1x1x256xf32> to vector<1x256xf32>
    %c0_207 = arith.constant 0 : index
    %c0_208 = arith.constant 0 : index
    %c0_209 = arith.constant 0 : index
    %374 = vector.load %arg3[%c0_207, %c0_208, %c0_209] : memref<8x8x256xbf16, #tpu.memory_space<vmem>>, vector<1x8x256xbf16>
    %375 = vector.shape_cast %374 : vector<1x8x256xbf16> to vector<8x256xbf16>
    %376 = arith.extf %375 : vector<8x256xbf16> to vector<8x256xf32>
    %c0_210 = arith.constant 0 : index
    %c0_211 = arith.constant 0 : index
    %c0_212 = arith.constant 0 : index
    %377 = vector.load %arg4[%c0_210, %c0_211, %c0_212] : memref<8x8x256xbf16, #tpu.memory_space<vmem>>, vector<1x8x256xbf16>
    %378 = vector.shape_cast %377 : vector<1x8x256xbf16> to vector<8x256xbf16>
    %379 = arith.extf %378 : vector<8x256xbf16> to vector<8x256xf32>
    %380 = vector.broadcast %371 : vector<1x256xf32> to vector<8x256xf32>
    %381 = arith.mulf %380, %376 : vector<8x256xf32>
    %382 = vector.broadcast %373 : vector<1x256xf32> to vector<8x256xf32>
    %383 = arith.mulf %382, %379 : vector<8x256xf32>
    %384 = arith.subf %381, %383 : vector<8x256xf32>
    %385 = arith.addf %368, %384 : vector<8x256xf32>
    %386 = vector.broadcast %371 : vector<1x256xf32> to vector<8x256xf32>
    %387 = arith.mulf %386, %379 : vector<8x256xf32>
    %388 = vector.broadcast %373 : vector<1x256xf32> to vector<8x256xf32>
    %389 = arith.mulf %388, %376 : vector<8x256xf32>
    %390 = arith.addf %387, %389 : vector<8x256xf32>
    %391 = arith.addf %369, %390 : vector<8x256xf32>
    %c2_213 = arith.constant 2 : index
    %c1_214 = arith.constant 1 : index
    %c0_215 = arith.constant 0 : index
    %392 = vector.load %arg1[%c2_213, %c1_214, %c0_215] : memref<4x8x256xf32, #tpu.memory_space<vmem>>, vector<1x1x256xf32>
    %393 = vector.shape_cast %392 : vector<1x1x256xf32> to vector<1x256xf32>
    %c2_216 = arith.constant 2 : index
    %c1_217 = arith.constant 1 : index
    %c0_218 = arith.constant 0 : index
    %394 = vector.load %arg2[%c2_216, %c1_217, %c0_218] : memref<4x8x256xf32, #tpu.memory_space<vmem>>, vector<1x1x256xf32>
    %395 = vector.shape_cast %394 : vector<1x1x256xf32> to vector<1x256xf32>
    %c1_219 = arith.constant 1 : index
    %c0_220 = arith.constant 0 : index
    %c0_221 = arith.constant 0 : index
    %396 = vector.load %arg3[%c1_219, %c0_220, %c0_221] : memref<8x8x256xbf16, #tpu.memory_space<vmem>>, vector<1x8x256xbf16>
    %397 = vector.shape_cast %396 : vector<1x8x256xbf16> to vector<8x256xbf16>
    %398 = arith.extf %397 : vector<8x256xbf16> to vector<8x256xf32>
    %c1_222 = arith.constant 1 : index
    %c0_223 = arith.constant 0 : index
    %c0_224 = arith.constant 0 : index
    %399 = vector.load %arg4[%c1_222, %c0_223, %c0_224] : memref<8x8x256xbf16, #tpu.memory_space<vmem>>, vector<1x8x256xbf16>
    %400 = vector.shape_cast %399 : vector<1x8x256xbf16> to vector<8x256xbf16>
    %401 = arith.extf %400 : vector<8x256xbf16> to vector<8x256xf32>
    %402 = vector.broadcast %393 : vector<1x256xf32> to vector<8x256xf32>
    %403 = arith.mulf %402, %398 : vector<8x256xf32>
    %404 = vector.broadcast %395 : vector<1x256xf32> to vector<8x256xf32>
    %405 = arith.mulf %404, %401 : vector<8x256xf32>
    %406 = arith.subf %403, %405 : vector<8x256xf32>
    %407 = arith.addf %385, %406 : vector<8x256xf32>
    %408 = vector.broadcast %393 : vector<1x256xf32> to vector<8x256xf32>
    %409 = arith.mulf %408, %401 : vector<8x256xf32>
    %410 = vector.broadcast %395 : vector<1x256xf32> to vector<8x256xf32>
    %411 = arith.mulf %410, %398 : vector<8x256xf32>
    %412 = arith.addf %409, %411 : vector<8x256xf32>
    %413 = arith.addf %391, %412 : vector<8x256xf32>
    %c2_225 = arith.constant 2 : index
    %c2_226 = arith.constant 2 : index
    %c0_227 = arith.constant 0 : index
    %414 = vector.load %arg1[%c2_225, %c2_226, %c0_227] : memref<4x8x256xf32, #tpu.memory_space<vmem>>, vector<1x1x256xf32>
    %415 = vector.shape_cast %414 : vector<1x1x256xf32> to vector<1x256xf32>
    %c2_228 = arith.constant 2 : index
    %c2_229 = arith.constant 2 : index
    %c0_230 = arith.constant 0 : index
    %416 = vector.load %arg2[%c2_228, %c2_229, %c0_230] : memref<4x8x256xf32, #tpu.memory_space<vmem>>, vector<1x1x256xf32>
    %417 = vector.shape_cast %416 : vector<1x1x256xf32> to vector<1x256xf32>
    %c2_231 = arith.constant 2 : index
    %c0_232 = arith.constant 0 : index
    %c0_233 = arith.constant 0 : index
    %418 = vector.load %arg3[%c2_231, %c0_232, %c0_233] : memref<8x8x256xbf16, #tpu.memory_space<vmem>>, vector<1x8x256xbf16>
    %419 = vector.shape_cast %418 : vector<1x8x256xbf16> to vector<8x256xbf16>
    %420 = arith.extf %419 : vector<8x256xbf16> to vector<8x256xf32>
    %c2_234 = arith.constant 2 : index
    %c0_235 = arith.constant 0 : index
    %c0_236 = arith.constant 0 : index
    %421 = vector.load %arg4[%c2_234, %c0_235, %c0_236] : memref<8x8x256xbf16, #tpu.memory_space<vmem>>, vector<1x8x256xbf16>
    %422 = vector.shape_cast %421 : vector<1x8x256xbf16> to vector<8x256xbf16>
    %423 = arith.extf %422 : vector<8x256xbf16> to vector<8x256xf32>
    %424 = vector.broadcast %415 : vector<1x256xf32> to vector<8x256xf32>
    %425 = arith.mulf %424, %420 : vector<8x256xf32>
    %426 = vector.broadcast %417 : vector<1x256xf32> to vector<8x256xf32>
    %427 = arith.mulf %426, %423 : vector<8x256xf32>
    %428 = arith.subf %425, %427 : vector<8x256xf32>
    %429 = arith.addf %407, %428 : vector<8x256xf32>
    %430 = vector.broadcast %415 : vector<1x256xf32> to vector<8x256xf32>
    %431 = arith.mulf %430, %423 : vector<8x256xf32>
    %432 = vector.broadcast %417 : vector<1x256xf32> to vector<8x256xf32>
    %433 = arith.mulf %432, %420 : vector<8x256xf32>
    %434 = arith.addf %431, %433 : vector<8x256xf32>
    %435 = arith.addf %413, %434 : vector<8x256xf32>
    %c2_237 = arith.constant 2 : index
    %c3_238 = arith.constant 3 : index
    %c0_239 = arith.constant 0 : index
    %436 = vector.load %arg1[%c2_237, %c3_238, %c0_239] : memref<4x8x256xf32, #tpu.memory_space<vmem>>, vector<1x1x256xf32>
    %437 = vector.shape_cast %436 : vector<1x1x256xf32> to vector<1x256xf32>
    %c2_240 = arith.constant 2 : index
    %c3_241 = arith.constant 3 : index
    %c0_242 = arith.constant 0 : index
    %438 = vector.load %arg2[%c2_240, %c3_241, %c0_242] : memref<4x8x256xf32, #tpu.memory_space<vmem>>, vector<1x1x256xf32>
    %439 = vector.shape_cast %438 : vector<1x1x256xf32> to vector<1x256xf32>
    %c3_243 = arith.constant 3 : index
    %c0_244 = arith.constant 0 : index
    %c0_245 = arith.constant 0 : index
    %440 = vector.load %arg3[%c3_243, %c0_244, %c0_245] : memref<8x8x256xbf16, #tpu.memory_space<vmem>>, vector<1x8x256xbf16>
    %441 = vector.shape_cast %440 : vector<1x8x256xbf16> to vector<8x256xbf16>
    %442 = arith.extf %441 : vector<8x256xbf16> to vector<8x256xf32>
    %c3_246 = arith.constant 3 : index
    %c0_247 = arith.constant 0 : index
    %c0_248 = arith.constant 0 : index
    %443 = vector.load %arg4[%c3_246, %c0_247, %c0_248] : memref<8x8x256xbf16, #tpu.memory_space<vmem>>, vector<1x8x256xbf16>
    %444 = vector.shape_cast %443 : vector<1x8x256xbf16> to vector<8x256xbf16>
    %445 = arith.extf %444 : vector<8x256xbf16> to vector<8x256xf32>
    %446 = vector.broadcast %437 : vector<1x256xf32> to vector<8x256xf32>
    %447 = arith.mulf %446, %442 : vector<8x256xf32>
    %448 = vector.broadcast %439 : vector<1x256xf32> to vector<8x256xf32>
    %449 = arith.mulf %448, %445 : vector<8x256xf32>
    %450 = arith.subf %447, %449 : vector<8x256xf32>
    %451 = arith.addf %429, %450 : vector<8x256xf32>
    %452 = vector.broadcast %437 : vector<1x256xf32> to vector<8x256xf32>
    %453 = arith.mulf %452, %445 : vector<8x256xf32>
    %454 = vector.broadcast %439 : vector<1x256xf32> to vector<8x256xf32>
    %455 = arith.mulf %454, %442 : vector<8x256xf32>
    %456 = arith.addf %453, %455 : vector<8x256xf32>
    %457 = arith.addf %435, %456 : vector<8x256xf32>
    %c2_249 = arith.constant 2 : index
    %c4_250 = arith.constant 4 : index
    %c0_251 = arith.constant 0 : index
    %458 = vector.load %arg1[%c2_249, %c4_250, %c0_251] : memref<4x8x256xf32, #tpu.memory_space<vmem>>, vector<1x1x256xf32>
    %459 = vector.shape_cast %458 : vector<1x1x256xf32> to vector<1x256xf32>
    %c2_252 = arith.constant 2 : index
    %c4_253 = arith.constant 4 : index
    %c0_254 = arith.constant 0 : index
    %460 = vector.load %arg2[%c2_252, %c4_253, %c0_254] : memref<4x8x256xf32, #tpu.memory_space<vmem>>, vector<1x1x256xf32>
    %461 = vector.shape_cast %460 : vector<1x1x256xf32> to vector<1x256xf32>
    %c4_255 = arith.constant 4 : index
    %c0_256 = arith.constant 0 : index
    %c0_257 = arith.constant 0 : index
    %462 = vector.load %arg3[%c4_255, %c0_256, %c0_257] : memref<8x8x256xbf16, #tpu.memory_space<vmem>>, vector<1x8x256xbf16>
    %463 = vector.shape_cast %462 : vector<1x8x256xbf16> to vector<8x256xbf16>
    %464 = arith.extf %463 : vector<8x256xbf16> to vector<8x256xf32>
    %c4_258 = arith.constant 4 : index
    %c0_259 = arith.constant 0 : index
    %c0_260 = arith.constant 0 : index
    %465 = vector.load %arg4[%c4_258, %c0_259, %c0_260] : memref<8x8x256xbf16, #tpu.memory_space<vmem>>, vector<1x8x256xbf16>
    %466 = vector.shape_cast %465 : vector<1x8x256xbf16> to vector<8x256xbf16>
    %467 = arith.extf %466 : vector<8x256xbf16> to vector<8x256xf32>
    %468 = vector.broadcast %459 : vector<1x256xf32> to vector<8x256xf32>
    %469 = arith.mulf %468, %464 : vector<8x256xf32>
    %470 = vector.broadcast %461 : vector<1x256xf32> to vector<8x256xf32>
    %471 = arith.mulf %470, %467 : vector<8x256xf32>
    %472 = arith.subf %469, %471 : vector<8x256xf32>
    %473 = arith.addf %451, %472 : vector<8x256xf32>
    %474 = vector.broadcast %459 : vector<1x256xf32> to vector<8x256xf32>
    %475 = arith.mulf %474, %467 : vector<8x256xf32>
    %476 = vector.broadcast %461 : vector<1x256xf32> to vector<8x256xf32>
    %477 = arith.mulf %476, %464 : vector<8x256xf32>
    %478 = arith.addf %475, %477 : vector<8x256xf32>
    %479 = arith.addf %457, %478 : vector<8x256xf32>
    %c2_261 = arith.constant 2 : index
    %c5_262 = arith.constant 5 : index
    %c0_263 = arith.constant 0 : index
    %480 = vector.load %arg1[%c2_261, %c5_262, %c0_263] : memref<4x8x256xf32, #tpu.memory_space<vmem>>, vector<1x1x256xf32>
    %481 = vector.shape_cast %480 : vector<1x1x256xf32> to vector<1x256xf32>
    %c2_264 = arith.constant 2 : index
    %c5_265 = arith.constant 5 : index
    %c0_266 = arith.constant 0 : index
    %482 = vector.load %arg2[%c2_264, %c5_265, %c0_266] : memref<4x8x256xf32, #tpu.memory_space<vmem>>, vector<1x1x256xf32>
    %483 = vector.shape_cast %482 : vector<1x1x256xf32> to vector<1x256xf32>
    %c5_267 = arith.constant 5 : index
    %c0_268 = arith.constant 0 : index
    %c0_269 = arith.constant 0 : index
    %484 = vector.load %arg3[%c5_267, %c0_268, %c0_269] : memref<8x8x256xbf16, #tpu.memory_space<vmem>>, vector<1x8x256xbf16>
    %485 = vector.shape_cast %484 : vector<1x8x256xbf16> to vector<8x256xbf16>
    %486 = arith.extf %485 : vector<8x256xbf16> to vector<8x256xf32>
    %c5_270 = arith.constant 5 : index
    %c0_271 = arith.constant 0 : index
    %c0_272 = arith.constant 0 : index
    %487 = vector.load %arg4[%c5_270, %c0_271, %c0_272] : memref<8x8x256xbf16, #tpu.memory_space<vmem>>, vector<1x8x256xbf16>
    %488 = vector.shape_cast %487 : vector<1x8x256xbf16> to vector<8x256xbf16>
    %489 = arith.extf %488 : vector<8x256xbf16> to vector<8x256xf32>
    %490 = vector.broadcast %481 : vector<1x256xf32> to vector<8x256xf32>
    %491 = arith.mulf %490, %486 : vector<8x256xf32>
    %492 = vector.broadcast %483 : vector<1x256xf32> to vector<8x256xf32>
    %493 = arith.mulf %492, %489 : vector<8x256xf32>
    %494 = arith.subf %491, %493 : vector<8x256xf32>
    %495 = arith.addf %473, %494 : vector<8x256xf32>
    %496 = vector.broadcast %481 : vector<1x256xf32> to vector<8x256xf32>
    %497 = arith.mulf %496, %489 : vector<8x256xf32>
    %498 = vector.broadcast %483 : vector<1x256xf32> to vector<8x256xf32>
    %499 = arith.mulf %498, %486 : vector<8x256xf32>
    %500 = arith.addf %497, %499 : vector<8x256xf32>
    %501 = arith.addf %479, %500 : vector<8x256xf32>
    %c2_273 = arith.constant 2 : index
    %c6_274 = arith.constant 6 : index
    %c0_275 = arith.constant 0 : index
    %502 = vector.load %arg1[%c2_273, %c6_274, %c0_275] : memref<4x8x256xf32, #tpu.memory_space<vmem>>, vector<1x1x256xf32>
    %503 = vector.shape_cast %502 : vector<1x1x256xf32> to vector<1x256xf32>
    %c2_276 = arith.constant 2 : index
    %c6_277 = arith.constant 6 : index
    %c0_278 = arith.constant 0 : index
    %504 = vector.load %arg2[%c2_276, %c6_277, %c0_278] : memref<4x8x256xf32, #tpu.memory_space<vmem>>, vector<1x1x256xf32>
    %505 = vector.shape_cast %504 : vector<1x1x256xf32> to vector<1x256xf32>
    %c6_279 = arith.constant 6 : index
    %c0_280 = arith.constant 0 : index
    %c0_281 = arith.constant 0 : index
    %506 = vector.load %arg3[%c6_279, %c0_280, %c0_281] : memref<8x8x256xbf16, #tpu.memory_space<vmem>>, vector<1x8x256xbf16>
    %507 = vector.shape_cast %506 : vector<1x8x256xbf16> to vector<8x256xbf16>
    %508 = arith.extf %507 : vector<8x256xbf16> to vector<8x256xf32>
    %c6_282 = arith.constant 6 : index
    %c0_283 = arith.constant 0 : index
    %c0_284 = arith.constant 0 : index
    %509 = vector.load %arg4[%c6_282, %c0_283, %c0_284] : memref<8x8x256xbf16, #tpu.memory_space<vmem>>, vector<1x8x256xbf16>
    %510 = vector.shape_cast %509 : vector<1x8x256xbf16> to vector<8x256xbf16>
    %511 = arith.extf %510 : vector<8x256xbf16> to vector<8x256xf32>
    %512 = vector.broadcast %503 : vector<1x256xf32> to vector<8x256xf32>
    %513 = arith.mulf %512, %508 : vector<8x256xf32>
    %514 = vector.broadcast %505 : vector<1x256xf32> to vector<8x256xf32>
    %515 = arith.mulf %514, %511 : vector<8x256xf32>
    %516 = arith.subf %513, %515 : vector<8x256xf32>
    %517 = arith.addf %495, %516 : vector<8x256xf32>
    %518 = vector.broadcast %503 : vector<1x256xf32> to vector<8x256xf32>
    %519 = arith.mulf %518, %511 : vector<8x256xf32>
    %520 = vector.broadcast %505 : vector<1x256xf32> to vector<8x256xf32>
    %521 = arith.mulf %520, %508 : vector<8x256xf32>
    %522 = arith.addf %519, %521 : vector<8x256xf32>
    %523 = arith.addf %501, %522 : vector<8x256xf32>
    %c2_285 = arith.constant 2 : index
    %c7_286 = arith.constant 7 : index
    %c0_287 = arith.constant 0 : index
    %524 = vector.load %arg1[%c2_285, %c7_286, %c0_287] : memref<4x8x256xf32, #tpu.memory_space<vmem>>, vector<1x1x256xf32>
    %525 = vector.shape_cast %524 : vector<1x1x256xf32> to vector<1x256xf32>
    %c2_288 = arith.constant 2 : index
    %c7_289 = arith.constant 7 : index
    %c0_290 = arith.constant 0 : index
    %526 = vector.load %arg2[%c2_288, %c7_289, %c0_290] : memref<4x8x256xf32, #tpu.memory_space<vmem>>, vector<1x1x256xf32>
    %527 = vector.shape_cast %526 : vector<1x1x256xf32> to vector<1x256xf32>
    %c7_291 = arith.constant 7 : index
    %c0_292 = arith.constant 0 : index
    %c0_293 = arith.constant 0 : index
    %528 = vector.load %arg3[%c7_291, %c0_292, %c0_293] : memref<8x8x256xbf16, #tpu.memory_space<vmem>>, vector<1x8x256xbf16>
    %529 = vector.shape_cast %528 : vector<1x8x256xbf16> to vector<8x256xbf16>
    %530 = arith.extf %529 : vector<8x256xbf16> to vector<8x256xf32>
    %c7_294 = arith.constant 7 : index
    %c0_295 = arith.constant 0 : index
    %c0_296 = arith.constant 0 : index
    %531 = vector.load %arg4[%c7_294, %c0_295, %c0_296] : memref<8x8x256xbf16, #tpu.memory_space<vmem>>, vector<1x8x256xbf16>
    %532 = vector.shape_cast %531 : vector<1x8x256xbf16> to vector<8x256xbf16>
    %533 = arith.extf %532 : vector<8x256xbf16> to vector<8x256xf32>
    %534 = vector.broadcast %525 : vector<1x256xf32> to vector<8x256xf32>
    %535 = arith.mulf %534, %530 : vector<8x256xf32>
    %536 = vector.broadcast %527 : vector<1x256xf32> to vector<8x256xf32>
    %537 = arith.mulf %536, %533 : vector<8x256xf32>
    %538 = arith.subf %535, %537 : vector<8x256xf32>
    %539 = arith.addf %517, %538 : vector<8x256xf32>
    %540 = vector.broadcast %525 : vector<1x256xf32> to vector<8x256xf32>
    %541 = arith.mulf %540, %533 : vector<8x256xf32>
    %542 = vector.broadcast %527 : vector<1x256xf32> to vector<8x256xf32>
    %543 = arith.mulf %542, %530 : vector<8x256xf32>
    %544 = arith.addf %541, %543 : vector<8x256xf32>
    %545 = arith.addf %523, %544 : vector<8x256xf32>
    %c2_297 = arith.constant 2 : index
    %c0_298 = arith.constant 0 : index
    %c0_299 = arith.constant 0 : index
    %546 = vector.load %arg5[%c2_297, %c0_298, %c0_299] : memref<4x8x256xf32, #tpu.memory_space<vmem>>, vector<1x8x256xf32>
    %547 = vector.shape_cast %546 : vector<1x8x256xf32> to vector<8x256xf32>
    %548 = vector.shape_cast %539 : vector<8x256xf32> to vector<1x8x256xf32>
    tpu.vector_store %arg5[%c2_297, %c0_298, %c0_299], %548 {strides = array<i32>} : memref<4x8x256xf32, #tpu.memory_space<vmem>>, vector<1x8x256xf32>,
    %c2_300 = arith.constant 2 : index
    %c0_301 = arith.constant 0 : index
    %c0_302 = arith.constant 0 : index
    %549 = vector.load %arg6[%c2_300, %c0_301, %c0_302] : memref<4x8x256xf32, #tpu.memory_space<vmem>>, vector<1x8x256xf32>
    %550 = vector.shape_cast %549 : vector<1x8x256xf32> to vector<8x256xf32>
    %551 = vector.shape_cast %545 : vector<8x256xf32> to vector<1x8x256xf32>
    tpu.vector_store %arg6[%c2_300, %c0_301, %c0_302], %551 {strides = array<i32>} : memref<4x8x256xf32, #tpu.memory_space<vmem>>, vector<1x8x256xf32>,
    %cst_303 = arith.constant 0.000000e+00 : f32
    %552 = vector.broadcast %cst_303 : f32 to vector<8x256xf32>
    %cst_304 = arith.constant 0.000000e+00 : f32
    %553 = vector.broadcast %cst_304 : f32 to vector<8x256xf32>
    %c3_305 = arith.constant 3 : index
    %c0_306 = arith.constant 0 : index
    %c0_307 = arith.constant 0 : index
    %554 = vector.load %arg1[%c3_305, %c0_306, %c0_307] : memref<4x8x256xf32, #tpu.memory_space<vmem>>, vector<1x1x256xf32>
    %555 = vector.shape_cast %554 : vector<1x1x256xf32> to vector<1x256xf32>
    %c3_308 = arith.constant 3 : index
    %c0_309 = arith.constant 0 : index
    %c0_310 = arith.constant 0 : index
    %556 = vector.load %arg2[%c3_308, %c0_309, %c0_310] : memref<4x8x256xf32, #tpu.memory_space<vmem>>, vector<1x1x256xf32>
    %557 = vector.shape_cast %556 : vector<1x1x256xf32> to vector<1x256xf32>
    %c0_311 = arith.constant 0 : index
    %c0_312 = arith.constant 0 : index
    %c0_313 = arith.constant 0 : index
    %558 = vector.load %arg3[%c0_311, %c0_312, %c0_313] : memref<8x8x256xbf16, #tpu.memory_space<vmem>>, vector<1x8x256xbf16>
    %559 = vector.shape_cast %558 : vector<1x8x256xbf16> to vector<8x256xbf16>
    %560 = arith.extf %559 : vector<8x256xbf16> to vector<8x256xf32>
    %c0_314 = arith.constant 0 : index
    %c0_315 = arith.constant 0 : index
    %c0_316 = arith.constant 0 : index
    %561 = vector.load %arg4[%c0_314, %c0_315, %c0_316] : memref<8x8x256xbf16, #tpu.memory_space<vmem>>, vector<1x8x256xbf16>
    %562 = vector.shape_cast %561 : vector<1x8x256xbf16> to vector<8x256xbf16>
    %563 = arith.extf %562 : vector<8x256xbf16> to vector<8x256xf32>
    %564 = vector.broadcast %555 : vector<1x256xf32> to vector<8x256xf32>
    %565 = arith.mulf %564, %560 : vector<8x256xf32>
    %566 = vector.broadcast %557 : vector<1x256xf32> to vector<8x256xf32>
    %567 = arith.mulf %566, %563 : vector<8x256xf32>
    %568 = arith.subf %565, %567 : vector<8x256xf32>
    %569 = arith.addf %552, %568 : vector<8x256xf32>
    %570 = vector.broadcast %555 : vector<1x256xf32> to vector<8x256xf32>
    %571 = arith.mulf %570, %563 : vector<8x256xf32>
    %572 = vector.broadcast %557 : vector<1x256xf32> to vector<8x256xf32>
    %573 = arith.mulf %572, %560 : vector<8x256xf32>
    %574 = arith.addf %571, %573 : vector<8x256xf32>
    %575 = arith.addf %553, %574 : vector<8x256xf32>
    %c3_317 = arith.constant 3 : index
    %c1_318 = arith.constant 1 : index
    %c0_319 = arith.constant 0 : index
    %576 = vector.load %arg1[%c3_317, %c1_318, %c0_319] : memref<4x8x256xf32, #tpu.memory_space<vmem>>, vector<1x1x256xf32>
    %577 = vector.shape_cast %576 : vector<1x1x256xf32> to vector<1x256xf32>
    %c3_320 = arith.constant 3 : index
    %c1_321 = arith.constant 1 : index
    %c0_322 = arith.constant 0 : index
    %578 = vector.load %arg2[%c3_320, %c1_321, %c0_322] : memref<4x8x256xf32, #tpu.memory_space<vmem>>, vector<1x1x256xf32>
    %579 = vector.shape_cast %578 : vector<1x1x256xf32> to vector<1x256xf32>
    %c1_323 = arith.constant 1 : index
    %c0_324 = arith.constant 0 : index
    %c0_325 = arith.constant 0 : index
    %580 = vector.load %arg3[%c1_323, %c0_324, %c0_325] : memref<8x8x256xbf16, #tpu.memory_space<vmem>>, vector<1x8x256xbf16>
    %581 = vector.shape_cast %580 : vector<1x8x256xbf16> to vector<8x256xbf16>
    %582 = arith.extf %581 : vector<8x256xbf16> to vector<8x256xf32>
    %c1_326 = arith.constant 1 : index
    %c0_327 = arith.constant 0 : index
    %c0_328 = arith.constant 0 : index
    %583 = vector.load %arg4[%c1_326, %c0_327, %c0_328] : memref<8x8x256xbf16, #tpu.memory_space<vmem>>, vector<1x8x256xbf16>
    %584 = vector.shape_cast %583 : vector<1x8x256xbf16> to vector<8x256xbf16>
    %585 = arith.extf %584 : vector<8x256xbf16> to vector<8x256xf32>
    %586 = vector.broadcast %577 : vector<1x256xf32> to vector<8x256xf32>
    %587 = arith.mulf %586, %582 : vector<8x256xf32>
    %588 = vector.broadcast %579 : vector<1x256xf32> to vector<8x256xf32>
    %589 = arith.mulf %588, %585 : vector<8x256xf32>
    %590 = arith.subf %587, %589 : vector<8x256xf32>
    %591 = arith.addf %569, %590 : vector<8x256xf32>
    %592 = vector.broadcast %577 : vector<1x256xf32> to vector<8x256xf32>
    %593 = arith.mulf %592, %585 : vector<8x256xf32>
    %594 = vector.broadcast %579 : vector<1x256xf32> to vector<8x256xf32>
    %595 = arith.mulf %594, %582 : vector<8x256xf32>
    %596 = arith.addf %593, %595 : vector<8x256xf32>
    %597 = arith.addf %575, %596 : vector<8x256xf32>
    %c3_329 = arith.constant 3 : index
    %c2_330 = arith.constant 2 : index
    %c0_331 = arith.constant 0 : index
    %598 = vector.load %arg1[%c3_329, %c2_330, %c0_331] : memref<4x8x256xf32, #tpu.memory_space<vmem>>, vector<1x1x256xf32>
    %599 = vector.shape_cast %598 : vector<1x1x256xf32> to vector<1x256xf32>
    %c3_332 = arith.constant 3 : index
    %c2_333 = arith.constant 2 : index
    %c0_334 = arith.constant 0 : index
    %600 = vector.load %arg2[%c3_332, %c2_333, %c0_334] : memref<4x8x256xf32, #tpu.memory_space<vmem>>, vector<1x1x256xf32>
    %601 = vector.shape_cast %600 : vector<1x1x256xf32> to vector<1x256xf32>
    %c2_335 = arith.constant 2 : index
    %c0_336 = arith.constant 0 : index
    %c0_337 = arith.constant 0 : index
    %602 = vector.load %arg3[%c2_335, %c0_336, %c0_337] : memref<8x8x256xbf16, #tpu.memory_space<vmem>>, vector<1x8x256xbf16>
    %603 = vector.shape_cast %602 : vector<1x8x256xbf16> to vector<8x256xbf16>
    %604 = arith.extf %603 : vector<8x256xbf16> to vector<8x256xf32>
    %c2_338 = arith.constant 2 : index
    %c0_339 = arith.constant 0 : index
    %c0_340 = arith.constant 0 : index
    %605 = vector.load %arg4[%c2_338, %c0_339, %c0_340] : memref<8x8x256xbf16, #tpu.memory_space<vmem>>, vector<1x8x256xbf16>
    %606 = vector.shape_cast %605 : vector<1x8x256xbf16> to vector<8x256xbf16>
    %607 = arith.extf %606 : vector<8x256xbf16> to vector<8x256xf32>
    %608 = vector.broadcast %599 : vector<1x256xf32> to vector<8x256xf32>
    %609 = arith.mulf %608, %604 : vector<8x256xf32>
    %610 = vector.broadcast %601 : vector<1x256xf32> to vector<8x256xf32>
    %611 = arith.mulf %610, %607 : vector<8x256xf32>
    %612 = arith.subf %609, %611 : vector<8x256xf32>
    %613 = arith.addf %591, %612 : vector<8x256xf32>
    %614 = vector.broadcast %599 : vector<1x256xf32> to vector<8x256xf32>
    %615 = arith.mulf %614, %607 : vector<8x256xf32>
    %616 = vector.broadcast %601 : vector<1x256xf32> to vector<8x256xf32>
    %617 = arith.mulf %616, %604 : vector<8x256xf32>
    %618 = arith.addf %615, %617 : vector<8x256xf32>
    %619 = arith.addf %597, %618 : vector<8x256xf32>
    %c3_341 = arith.constant 3 : index
    %c3_342 = arith.constant 3 : index
    %c0_343 = arith.constant 0 : index
    %620 = vector.load %arg1[%c3_341, %c3_342, %c0_343] : memref<4x8x256xf32, #tpu.memory_space<vmem>>, vector<1x1x256xf32>
    %621 = vector.shape_cast %620 : vector<1x1x256xf32> to vector<1x256xf32>
    %c3_344 = arith.constant 3 : index
    %c3_345 = arith.constant 3 : index
    %c0_346 = arith.constant 0 : index
    %622 = vector.load %arg2[%c3_344, %c3_345, %c0_346] : memref<4x8x256xf32, #tpu.memory_space<vmem>>, vector<1x1x256xf32>
    %623 = vector.shape_cast %622 : vector<1x1x256xf32> to vector<1x256xf32>
    %c3_347 = arith.constant 3 : index
    %c0_348 = arith.constant 0 : index
    %c0_349 = arith.constant 0 : index
    %624 = vector.load %arg3[%c3_347, %c0_348, %c0_349] : memref<8x8x256xbf16, #tpu.memory_space<vmem>>, vector<1x8x256xbf16>
    %625 = vector.shape_cast %624 : vector<1x8x256xbf16> to vector<8x256xbf16>
    %626 = arith.extf %625 : vector<8x256xbf16> to vector<8x256xf32>
    %c3_350 = arith.constant 3 : index
    %c0_351 = arith.constant 0 : index
    %c0_352 = arith.constant 0 : index
    %627 = vector.load %arg4[%c3_350, %c0_351, %c0_352] : memref<8x8x256xbf16, #tpu.memory_space<vmem>>, vector<1x8x256xbf16>
    %628 = vector.shape_cast %627 : vector<1x8x256xbf16> to vector<8x256xbf16>
    %629 = arith.extf %628 : vector<8x256xbf16> to vector<8x256xf32>
    %630 = vector.broadcast %621 : vector<1x256xf32> to vector<8x256xf32>
    %631 = arith.mulf %630, %626 : vector<8x256xf32>
    %632 = vector.broadcast %623 : vector<1x256xf32> to vector<8x256xf32>
    %633 = arith.mulf %632, %629 : vector<8x256xf32>
    %634 = arith.subf %631, %633 : vector<8x256xf32>
    %635 = arith.addf %613, %634 : vector<8x256xf32>
    %636 = vector.broadcast %621 : vector<1x256xf32> to vector<8x256xf32>
    %637 = arith.mulf %636, %629 : vector<8x256xf32>
    %638 = vector.broadcast %623 : vector<1x256xf32> to vector<8x256xf32>
    %639 = arith.mulf %638, %626 : vector<8x256xf32>
    %640 = arith.addf %637, %639 : vector<8x256xf32>
    %641 = arith.addf %619, %640 : vector<8x256xf32>
    %c3_353 = arith.constant 3 : index
    %c4_354 = arith.constant 4 : index
    %c0_355 = arith.constant 0 : index
    %642 = vector.load %arg1[%c3_353, %c4_354, %c0_355] : memref<4x8x256xf32, #tpu.memory_space<vmem>>, vector<1x1x256xf32>
    %643 = vector.shape_cast %642 : vector<1x1x256xf32> to vector<1x256xf32>
    %c3_356 = arith.constant 3 : index
    %c4_357 = arith.constant 4 : index
    %c0_358 = arith.constant 0 : index
    %644 = vector.load %arg2[%c3_356, %c4_357, %c0_358] : memref<4x8x256xf32, #tpu.memory_space<vmem>>, vector<1x1x256xf32>
    %645 = vector.shape_cast %644 : vector<1x1x256xf32> to vector<1x256xf32>
    %c4_359 = arith.constant 4 : index
    %c0_360 = arith.constant 0 : index
    %c0_361 = arith.constant 0 : index
    %646 = vector.load %arg3[%c4_359, %c0_360, %c0_361] : memref<8x8x256xbf16, #tpu.memory_space<vmem>>, vector<1x8x256xbf16>
    %647 = vector.shape_cast %646 : vector<1x8x256xbf16> to vector<8x256xbf16>
    %648 = arith.extf %647 : vector<8x256xbf16> to vector<8x256xf32>
    %c4_362 = arith.constant 4 : index
    %c0_363 = arith.constant 0 : index
    %c0_364 = arith.constant 0 : index
    %649 = vector.load %arg4[%c4_362, %c0_363, %c0_364] : memref<8x8x256xbf16, #tpu.memory_space<vmem>>, vector<1x8x256xbf16>
    %650 = vector.shape_cast %649 : vector<1x8x256xbf16> to vector<8x256xbf16>
    %651 = arith.extf %650 : vector<8x256xbf16> to vector<8x256xf32>
    %652 = vector.broadcast %643 : vector<1x256xf32> to vector<8x256xf32>
    %653 = arith.mulf %652, %648 : vector<8x256xf32>
    %654 = vector.broadcast %645 : vector<1x256xf32> to vector<8x256xf32>
    %655 = arith.mulf %654, %651 : vector<8x256xf32>
    %656 = arith.subf %653, %655 : vector<8x256xf32>
    %657 = arith.addf %635, %656 : vector<8x256xf32>
    %658 = vector.broadcast %643 : vector<1x256xf32> to vector<8x256xf32>
    %659 = arith.mulf %658, %651 : vector<8x256xf32>
    %660 = vector.broadcast %645 : vector<1x256xf32> to vector<8x256xf32>
    %661 = arith.mulf %660, %648 : vector<8x256xf32>
    %662 = arith.addf %659, %661 : vector<8x256xf32>
    %663 = arith.addf %641, %662 : vector<8x256xf32>
    %c3_365 = arith.constant 3 : index
    %c5_366 = arith.constant 5 : index
    %c0_367 = arith.constant 0 : index
    %664 = vector.load %arg1[%c3_365, %c5_366, %c0_367] : memref<4x8x256xf32, #tpu.memory_space<vmem>>, vector<1x1x256xf32>
    %665 = vector.shape_cast %664 : vector<1x1x256xf32> to vector<1x256xf32>
    %c3_368 = arith.constant 3 : index
    %c5_369 = arith.constant 5 : index
    %c0_370 = arith.constant 0 : index
    %666 = vector.load %arg2[%c3_368, %c5_369, %c0_370] : memref<4x8x256xf32, #tpu.memory_space<vmem>>, vector<1x1x256xf32>
    %667 = vector.shape_cast %666 : vector<1x1x256xf32> to vector<1x256xf32>
    %c5_371 = arith.constant 5 : index
    %c0_372 = arith.constant 0 : index
    %c0_373 = arith.constant 0 : index
    %668 = vector.load %arg3[%c5_371, %c0_372, %c0_373] : memref<8x8x256xbf16, #tpu.memory_space<vmem>>, vector<1x8x256xbf16>
    %669 = vector.shape_cast %668 : vector<1x8x256xbf16> to vector<8x256xbf16>
    %670 = arith.extf %669 : vector<8x256xbf16> to vector<8x256xf32>
    %c5_374 = arith.constant 5 : index
    %c0_375 = arith.constant 0 : index
    %c0_376 = arith.constant 0 : index
    %671 = vector.load %arg4[%c5_374, %c0_375, %c0_376] : memref<8x8x256xbf16, #tpu.memory_space<vmem>>, vector<1x8x256xbf16>
    %672 = vector.shape_cast %671 : vector<1x8x256xbf16> to vector<8x256xbf16>
    %673 = arith.extf %672 : vector<8x256xbf16> to vector<8x256xf32>
    %674 = vector.broadcast %665 : vector<1x256xf32> to vector<8x256xf32>
    %675 = arith.mulf %674, %670 : vector<8x256xf32>
    %676 = vector.broadcast %667 : vector<1x256xf32> to vector<8x256xf32>
    %677 = arith.mulf %676, %673 : vector<8x256xf32>
    %678 = arith.subf %675, %677 : vector<8x256xf32>
    %679 = arith.addf %657, %678 : vector<8x256xf32>
    %680 = vector.broadcast %665 : vector<1x256xf32> to vector<8x256xf32>
    %681 = arith.mulf %680, %673 : vector<8x256xf32>
    %682 = vector.broadcast %667 : vector<1x256xf32> to vector<8x256xf32>
    %683 = arith.mulf %682, %670 : vector<8x256xf32>
    %684 = arith.addf %681, %683 : vector<8x256xf32>
    %685 = arith.addf %663, %684 : vector<8x256xf32>
    %c3_377 = arith.constant 3 : index
    %c6_378 = arith.constant 6 : index
    %c0_379 = arith.constant 0 : index
    %686 = vector.load %arg1[%c3_377, %c6_378, %c0_379] : memref<4x8x256xf32, #tpu.memory_space<vmem>>, vector<1x1x256xf32>
    %687 = vector.shape_cast %686 : vector<1x1x256xf32> to vector<1x256xf32>
    %c3_380 = arith.constant 3 : index
    %c6_381 = arith.constant 6 : index
    %c0_382 = arith.constant 0 : index
    %688 = vector.load %arg2[%c3_380, %c6_381, %c0_382] : memref<4x8x256xf32, #tpu.memory_space<vmem>>, vector<1x1x256xf32>
    %689 = vector.shape_cast %688 : vector<1x1x256xf32> to vector<1x256xf32>
    %c6_383 = arith.constant 6 : index
    %c0_384 = arith.constant 0 : index
    %c0_385 = arith.constant 0 : index
    %690 = vector.load %arg3[%c6_383, %c0_384, %c0_385] : memref<8x8x256xbf16, #tpu.memory_space<vmem>>, vector<1x8x256xbf16>
    %691 = vector.shape_cast %690 : vector<1x8x256xbf16> to vector<8x256xbf16>
    %692 = arith.extf %691 : vector<8x256xbf16> to vector<8x256xf32>
    %c6_386 = arith.constant 6 : index
    %c0_387 = arith.constant 0 : index
    %c0_388 = arith.constant 0 : index
    %693 = vector.load %arg4[%c6_386, %c0_387, %c0_388] : memref<8x8x256xbf16, #tpu.memory_space<vmem>>, vector<1x8x256xbf16>
    %694 = vector.shape_cast %693 : vector<1x8x256xbf16> to vector<8x256xbf16>
    %695 = arith.extf %694 : vector<8x256xbf16> to vector<8x256xf32>
    %696 = vector.broadcast %687 : vector<1x256xf32> to vector<8x256xf32>
    %697 = arith.mulf %696, %692 : vector<8x256xf32>
    %698 = vector.broadcast %689 : vector<1x256xf32> to vector<8x256xf32>
    %699 = arith.mulf %698, %695 : vector<8x256xf32>
    %700 = arith.subf %697, %699 : vector<8x256xf32>
    %701 = arith.addf %679, %700 : vector<8x256xf32>
    %702 = vector.broadcast %687 : vector<1x256xf32> to vector<8x256xf32>
    %703 = arith.mulf %702, %695 : vector<8x256xf32>
    %704 = vector.broadcast %689 : vector<1x256xf32> to vector<8x256xf32>
    %705 = arith.mulf %704, %692 : vector<8x256xf32>
    %706 = arith.addf %703, %705 : vector<8x256xf32>
    %707 = arith.addf %685, %706 : vector<8x256xf32>
    %c3_389 = arith.constant 3 : index
    %c7_390 = arith.constant 7 : index
    %c0_391 = arith.constant 0 : index
    %708 = vector.load %arg1[%c3_389, %c7_390, %c0_391] : memref<4x8x256xf32, #tpu.memory_space<vmem>>, vector<1x1x256xf32>
    %709 = vector.shape_cast %708 : vector<1x1x256xf32> to vector<1x256xf32>
    %c3_392 = arith.constant 3 : index
    %c7_393 = arith.constant 7 : index
    %c0_394 = arith.constant 0 : index
    %710 = vector.load %arg2[%c3_392, %c7_393, %c0_394] : memref<4x8x256xf32, #tpu.memory_space<vmem>>, vector<1x1x256xf32>
    %711 = vector.shape_cast %710 : vector<1x1x256xf32> to vector<1x256xf32>
    %c7_395 = arith.constant 7 : index
    %c0_396 = arith.constant 0 : index
    %c0_397 = arith.constant 0 : index
    %712 = vector.load %arg3[%c7_395, %c0_396, %c0_397] : memref<8x8x256xbf16, #tpu.memory_space<vmem>>, vector<1x8x256xbf16>
    %713 = vector.shape_cast %712 : vector<1x8x256xbf16> to vector<8x256xbf16>
    %714 = arith.extf %713 : vector<8x256xbf16> to vector<8x256xf32>
    %c7_398 = arith.constant 7 : index
    %c0_399 = arith.constant 0 : index
    %c0_400 = arith.constant 0 : index
    %715 = vector.load %arg4[%c7_398, %c0_399, %c0_400] : memref<8x8x256xbf16, #tpu.memory_space<vmem>>, vector<1x8x256xbf16>
    %716 = vector.shape_cast %715 : vector<1x8x256xbf16> to vector<8x256xbf16>
    %717 = arith.extf %716 : vector<8x256xbf16> to vector<8x256xf32>
    %718 = vector.broadcast %709 : vector<1x256xf32> to vector<8x256xf32>
    %719 = arith.mulf %718, %714 : vector<8x256xf32>
    %720 = vector.broadcast %711 : vector<1x256xf32> to vector<8x256xf32>
    %721 = arith.mulf %720, %717 : vector<8x256xf32>
    %722 = arith.subf %719, %721 : vector<8x256xf32>
    %723 = arith.addf %701, %722 : vector<8x256xf32>
    %724 = vector.broadcast %709 : vector<1x256xf32> to vector<8x256xf32>
    %725 = arith.mulf %724, %717 : vector<8x256xf32>
    %726 = vector.broadcast %711 : vector<1x256xf32> to vector<8x256xf32>
    %727 = arith.mulf %726, %714 : vector<8x256xf32>
    %728 = arith.addf %725, %727 : vector<8x256xf32>
    %729 = arith.addf %707, %728 : vector<8x256xf32>
    %c3_401 = arith.constant 3 : index
    %c0_402 = arith.constant 0 : index
    %c0_403 = arith.constant 0 : index
    %730 = vector.load %arg5[%c3_401, %c0_402, %c0_403] : memref<4x8x256xf32, #tpu.memory_space<vmem>>, vector<1x8x256xf32>
    %731 = vector.shape_cast %730 : vector<1x8x256xf32> to vector<8x256xf32>
    %732 = vector.shape_cast %723 : vector<8x256xf32> to vector<1x8x256xf32>
    tpu.vector_store %arg5[%c3_401, %c0_402, %c0_403], %732 {strides = array<i32>} : memref<4x8x256xf32, #tpu.memory_space<vmem>>, vector<1x8x256xf32>,
    %c3_404 = arith.constant 3 : index
    %c0_405 = arith.constant 0 : index
    %c0_406 = arith.constant 0 : index
    %733 = vector.load %arg6[%c3_404, %c0_405, %c0_406] : memref<4x8x256xf32, #tpu.memory_space<vmem>>, vector<1x8x256xf32>
    %734 = vector.shape_cast %733 : vector<1x8x256xf32> to vector<8x256xf32>
    %735 = vector.shape_cast %729 : vector<8x256xf32> to vector<1x8x256xf32>
    tpu.vector_store %arg6[%c3_404, %c0_405, %c0_406], %735 {strides = array<i32>} : memref<4x8x256xf32, #tpu.memory_space<vmem>>, vector<1x8x256xf32>,
    return
  }
  func.func @transform_0(%arg0: i32) -> (i32, i32, i32) {
    %c0_i32 = arith.constant 0 : i32
    %c0_i32_0 = arith.constant 0 : i32
    %c0_i32_1 = arith.constant 0 : i32
    return %c0_i32, %c0_i32_0, %arg0 : i32, i32, i32
  }
  func.func @transform_1(%arg0: i32) -> (i32, i32, i32) {
    %c0_i32 = arith.constant 0 : i32
    %c0_i32_0 = arith.constant 0 : i32
    %c0_i32_1 = arith.constant 0 : i32
    return %c0_i32, %c0_i32_0, %arg0 : i32, i32, i32
  }
  func.func @transform_2(%arg0: i32) -> (i32, i32, i32) {
    %c0_i32 = arith.constant 0 : i32
    %c0_i32_0 = arith.constant 0 : i32
    %c0_i32_1 = arith.constant 0 : i32
    return %c0_i32, %c0_i32_0, %arg0 : i32, i32, i32
  }
  func.func @transform_3(%arg0: i32) -> (i32, i32, i32) {
    %c0_i32 = arith.constant 0 : i32
    %c0_i32_0 = arith.constant 0 : i32
    %c0_i32_1 = arith.constant 0 : i32
    return %c0_i32, %c0_i32_0, %arg0 : i32, i32, i32
  }
  func.func @transform_4(%arg0: i32) -> (i32, i32, i32) {
    %c0_i32 = arith.constant 0 : i32
    %c0_i32_0 = arith.constant 0 : i32
    %c0_i32_1 = arith.constant 0 : i32
    return %c0_i32, %c0_i32_0, %arg0 : i32, i32, i32
  }
  func.func @transform_5(%arg0: i32) -> (i32, i32, i32) {
    %c0_i32 = arith.constant 0 : i32
    %c0_i32_0 = arith.constant 0 : i32
    %c0_i32_1 = arith.constant 0 : i32
    return %c0_i32, %c0_i32_0, %arg0 : i32, i32, i32
  }
}

</mosaic_0001>

<bundles_post_ra>
// kernel: rsd_efficient_forward.1
= control target key start
LH: loop header
LB: loop body
LE: loop exit
PB: predicated region body
PF: predicated region fallthrough
CT: control target
= control target key end

     0   :  { %s3019_s0 = inlined_call_operand.vmem [shape: f32[4,8,256], index: 0, kind: input, shape index: {}]   ;;  %s3020_s1 = inlined_call_operand.vmem [shape: f32[4,8,256], index: 1, kind: input, shape index: {}]   ;;  %s3021_s2 = inlined_call_operand.vmem [shape: bf16[8,8,256], index: 2, kind: input, shape index: {}]   ;;  %s3022_s3 = inlined_call_operand.vmem [shape: bf16[8,8,256], index: 3, kind: input, shape index: {}]   ;;  %s3023_s4 = inlined_call_operand.vmem [shape: f32[4,8,256], index: 4, kind: output, shape index: {0}]   ;;  %s3024_s5 = inlined_call_operand.vmem [shape: f32[4,8,256], index: 5, kind: output, shape index: {1}]  }
   0x1   :  { %v1418_v0 = vld [vmem:[%s3019_s0] ss:$8 sm:$0x3]  ;;  %v1444_v10 = vld [vmem:[%s3019_s0 + $0x1] ss:$8 sm:$0x3] }
   0x2   :  { %v1423_v1 = vld [vmem:[%s3020_s1] ss:$8 sm:$0x3]  ;;  %v3037_v4 = vperm.slane %v1418_v0, 0  ;;  %v3038_v7 = vperm.slane %v1418_v0, 1  ;;  %v3034_v15 = vperm.slane %v1444_v10, 0 }
   0x3   :  { %v21_v2 = vld [vmem:[%s3021_s2] sm:$0xff]  ;;  %v3036_v5 = vperm.slane %v1423_v1, 0  ;;  %v1257_v6 = vld [vmem:[%s3021_s2 + $0x8] sm:$0xff]  ;;  %v1488_v24 = vld [vmem:[%s3021_s2 + $0x10] sm:$0xff] }
   0x4   :  { %v24_v3 = vld [vmem:[%s3022_s3] sm:$0xff]  ;;  %v1437_v8 = vunpack.c.l.bf16 %v21_v2  ;;  %v1451_v12 = vunpack.c.l.bf16 %v1257_v6  ;;  %v1453_v13 = vunpack.c.h.bf16 %v21_v2  ;;  %v1458_v14 = vld [vmem:[%s3022_s3 + $0x8] sm:$0xff]  ;;  %v1469_v19 = vunpack.c.h.bf16 %v1257_v6  ;;  %v1493_v25 = vld [vmem:[%s3022_s3 + $0x10] sm:$0xff] }
   0x5   :  { %v1439_v9 = vunpack.c.l.bf16 %v24_v3  ;;  %v1449_v11 = vld [vmem:[%s3020_s1 + $0x1] ss:$8 sm:$0x3]  ;;  %v1465_v17 = vld [vmem:[%s3019_s0 + $0x2] ss:$8 sm:$0x3]  ;;  %v1467_v18 = vunpack.c.h.bf16 %v24_v3  ;;  %v1478_v22 = vunpack.c.l.bf16 %v1458_v14  ;;  %v1500_v28 = vunpack.c.l.bf16 %v1488_v24 }
   0x6   :  { %3202 = vst [vmem:[#allocation2_spill] sm:$0xff] %v1437_v8  ;;  %v3033_v16 = vperm.slane %v1449_v11, 0  ;;  %v32_v20 = vmul.f32 %v3037_v4, %v1437_v8  ;;  %v1483_v23 = vld [vmem:[%s3020_s1 + $0x2] ss:$8 sm:$0x3]  ;;  %v3031_v26 = vperm.slane %v1465_v17, 0  ;;  %v70_v27 = vmul.f32 %v3034_v15, %v1451_v12 }
   0x7   :  { %3203 = vst [vmem:[#allocation3_spill] sm:$0xff] %v1439_v9  ;;  %v39_v21 = vmul.f32 %v3036_v5, %v1439_v9  ;;  %v1503_v29 = vunpack.c.l.bf16 %v1493_v25  ;;  %v3029_v30 = vperm.slane %v1483_v23, 0  ;;  %v1509_v31 = vld [vmem:[%s3019_s0 + $0x3] ss:$8 sm:$0x3]  ;;  %v1514_v32 = vld [vmem:[%s3021_s2 + $0x18] sm:$0xff]  ;;  %v1684_v5 = vunpack.c.h.bf16 %v1458_v14 }
   0x8   :  { %3204 = vst [vmem:[#allocation4_spill] sm:$0xff] %v1451_v12  ;;  %v1519_v33 = vld [vmem:[%s3022_s3 + $0x18] sm:$0xff]  ;;  %v77_v35 = vmul.f32 %v3033_v16, %v1478_v22  ;;  %v1527_v36 = vld [vmem:[%s3020_s1 + $0x3] ss:$8 sm:$0x3]  ;;  %v1530_v37 = vunpack.c.l.bf16 %v1514_v32  ;;  %v108_v40 = vmul.f32 %v3031_v26, %v1500_v28  ;;  %v3028_v42 = vperm.slane %v1509_v31, 0 }
   0x9   :  { %3205 = vst [vmem:[#allocation5_spill] sm:$0xff] %v1453_v13  ;;  %v41_v34 = vsub.f32 %v32_v20, %v39_v21  ;;  %v1533_v38 = vunpack.c.l.bf16 %v1519_v33  ;;  %v1538_v39 = vld [vmem:[%s3019_s0 + $0x4] ss:$8 sm:$0x3]  ;;  %v115_v41 = vmul.f32 %v3029_v30, %v1503_v29  ;;  %v3027_v43 = vperm.slane %v1527_v36, 0 }
   0xa   :  { %3206 = vst [vmem:[#allocation6_spill] sm:$0xff] %v1478_v22  ;;  %v1551_v44 = vld [vmem:[%s3020_s1 + $0x4] ss:$8 sm:$0x3]  ;;  %v79_v46 = vsub.f32 %v70_v27, %v77_v35  ;;  %v3026_v49 = vperm.slane %v1538_v39, 0  ;;  %v146_v53 = vmul.f32 %v3028_v42, %v1530_v37  ;;  %v1624_v27 = vld [vmem:[%s3021_s2 + $0x30] sm:$0xff]  ;;  %v1698_v14 = vunpack.c.h.bf16 %v1488_v24 }
   0xb   :  { %3207 = vst [vmem:[#allocation7_spill] sm:$0xff] %v1500_v28  ;;  %v1556_v45 = vld [vmem:[%s3021_s2 + $0x20] sm:$0xff]  ;;  %v3025_v50 = vperm.slane %v1551_v44, 0  ;;  %v117_v52 = vsub.f32 %v108_v40, %v115_v41  ;;  %v153_v54 = vmul.f32 %v3027_v43, %v1533_v38  ;;  %v1590_v57 = vld [vmem:[%s3021_s2 + $0x28] sm:$0xff]  ;;  %v1634_v35 = vld [vmem:[%s3021_s2 + $0x38] sm:$0xff]  ;;  %v1637_v41 = vunpack.c.l.bf16 %v1624_v27 }
   0xc   :  { %3208 = vst [vmem:[#allocation8_spill] sm:$0xff] %v1503_v29  ;;  %v1559_v47 = vunpack.c.l.bf16 %v1556_v45  ;;  %v1564_v48 = vld [vmem:[%s3022_s3 + $0x20] sm:$0xff]  ;;  %v1595_v58 = vld [vmem:[%s3022_s3 + $0x28] sm:$0xff]  ;;  %v81_v59 = vadd.f32 %v79_v46, %v41_v34  ;;  %v1601_v61 = vunpack.c.l.bf16 %v1590_v57  ;;  %v1629_v34 = vld [vmem:[%s3022_s3 + $0x30] sm:$0xff] }
   0xd   :  { %3209 = vst [vmem:[#allocation9_spill] sm:$0xff] %v1530_v37  ;;  %v1571_v51 = vld [vmem:[%s3019_s0 + $0x5] ss:$8 sm:$0x3]  ;;  %v1580_v55 = vunpack.c.l.bf16 %v1564_v48  ;;  %v1604_v62 = vunpack.c.l.bf16 %v1595_v58  ;;  %v155_v3 = vsub.f32 %v146_v53, %v153_v54  ;;  %v1640_v46 = vunpack.c.l.bf16 %v1629_v34 }
   0xe   :  { %3210 = vst [vmem:[#allocation10_spill] sm:$0xff] %v1559_v47  ;;  %v1585_v56 = vld [vmem:[%s3020_s1 + $0x5] ss:$8 sm:$0x3]  ;;  %v184_v60 = vmul.f32 %v3026_v49, %v1559_v47  ;;  %v3030_v20 = vperm.slane %v1571_v51, 0  ;;  %v119_v40 = vadd.f32 %v117_v52, %v81_v59 }
   0xf   :  { %3211 = vst [vmem:[#allocation11_spill] sm:$0xff] %v1604_v62  ;;  %v1609_v63 = vld [vmem:[%s3019_s0 + $0x6] ss:$8 sm:$0x3]  ;;  %v191_v6 = vmul.f32 %v3025_v50, %v1580_v55  ;;  %v3032_v21 = vperm.slane %v1585_v56, 0  ;;  %v1651_v50 = vld [vmem:[%s3022_s3 + $0x38] sm:$0xff] }
  0x10   :  { %v1614_v2 = vld [vmem:[%s3020_s1 + $0x6] ss:$8 sm:$0x3]  ;;  %v3035_v53 = vperm.slane %v1609_v63, 0  ;;  %v222_v52 = vmul.f32 %v3030_v20, %v1601_v61  ;;  %v157_v30 = vadd.f32 %v155_v3, %v119_v40  ;;  %v1672_v20 = vunpack.c.l.bf16 %v1651_v50  ;;  %3212 = vst [vmem:[#allocation12_spill] sm:$0xff] %v1698_v14 }
  0x11   :  { %v1646_v54 = vld [vmem:[%s3019_s0 + $0x7] ss:$8 sm:$0x3]  ;;  %v193_v49 = vsub.f32 %v184_v60, %v191_v6  ;;  %v229_v59 = vmul.f32 %v3032_v21, %v1604_v62  ;;  %v3039_v43 = vperm.slane %v1614_v2, 0  ;;  %v1669_v6 = vunpack.c.l.bf16 %v1634_v35 }
  0x12   :  { %v1663_v42 = vld [vmem:[%s3020_s1 + $0x7] ss:$8 sm:$0x3]  ;;  %v260_v60 = vmul.f32 %v3035_v53, %v1637_v41  ;;  %v3040_v16 = vperm.slane %v1646_v54, 0  ;;  %v33_v40 = vmul.f32 %v3038_v7, %v1453_v13  ;;  %v3042_v53 = vperm.slane %v1423_v1, 1 }
  0x13   :  { %v231_v26 = vsub.f32 %v222_v52, %v229_v59  ;;  %v267_v21 = vmul.f32 %v3039_v43, %v1640_v46  ;;  %v3041_v15 = vperm.slane %v1663_v42, 0  ;;  %v195_v3 = vadd.f32 %v193_v49, %v157_v30 }
  0x14   :  { %v298_v52 = vmul.f32 %v3040_v16, %v1669_v6  ;;  %v3057_v30 = vperm.slane %v1444_v10, 1  ;;  %v40_v7 = vmul.f32 %v3042_v53, %v1467_v18  ;;  %v3046_v43 = vperm.slane %v1449_v11, 1 }
  0x15   :  { %v269_v4 = vsub.f32 %v260_v60, %v267_v21  ;;  %v305_v59 = vmul.f32 %v3041_v15, %v1672_v20  ;;  %v233_v49 = vadd.f32 %v231_v26, %v195_v3  ;;  %v1704_v16 = vunpack.c.h.bf16 %v1493_v25 }
  0x16   :  { %v71_v60 = vmul.f32 %v3057_v30, %v1469_v19  ;;  %v3045_v15 = vperm.slane %v1465_v17, 1  ;;  %v42_v3 = vsub.f32 %v33_v40, %v40_v7  ;;  %v78_v53 = vmul.f32 %v3046_v43, %v1684_v5 }
  0x17   :  { %v307_v21 = vsub.f32 %v298_v52, %v305_v59  ;;  %v271_v26 = vadd.f32 %v269_v4, %v233_v49  ;;  %v3054_v13 = vperm.slane %v1483_v23, 1  ;;  %v1715_v52 = vunpack.c.h.bf16 %v1514_v32 }
  0x18   :  { %v109_v24 = vmul.f32 %v3045_v15, %v1698_v14  ;;  %v1718_v25 = vunpack.c.h.bf16 %v1519_v33  ;;  %v3047_v59 = vperm.slane %v1509_v31, 1  ;;  %v80_v7 = vsub.f32 %v71_v60, %v78_v53 }
  0x19   :  { %3213 = vst [vmem:[#allocation13_spill] sm:$0xff] %v1715_v52  ;;  %v309_v4 = vadd.f32 %v307_v21, %v271_v26  ;;  %v116_v40 = vmul.f32 %v3054_v13, %v1704_v16  ;;  %v3049_v49 = vperm.slane %v1527_v36, 1  ;;  %v1729_v32 = vunpack.c.h.bf16 %v1556_v45 }
  0x1a   :  { %v147_v15 = vmul.f32 %v3047_v59, %v1715_v52  ;;  %v1732_v33 = vunpack.c.h.bf16 %v1564_v48  ;;  %v3048_v43 = vperm.slane %v1538_v39, 1  ;;  %v82_v53 = vadd.f32 %v80_v7, %v42_v3 }
  0x1b   :  { %319 = vst [vmem:[%s3023_s4] sm:$0xff] %v309_v4  ;;  %v118_v21 = vsub.f32 %v109_v24, %v116_v40  ;;  %v154_v60 = vmul.f32 %v3049_v49, %v1718_v25  ;;  %v3051_v26 = vperm.slane %v1551_v44, 1  ;;  %v1746_v48 = vunpack.c.h.bf16 %v1590_v57 }
  0x1c   :  { %v185_v45 = vmul.f32 %v3048_v43, %v1729_v32  ;;  %v1749_v59 = vunpack.c.h.bf16 %v1595_v58  ;;  %v3050_v4 = vperm.slane %v1571_v51, 1  ;;  %v3053_v40 = vperm.slane %v1585_v56, 1 }
  0x1d   :  { %v120_v3 = vadd.f32 %v118_v21, %v82_v53  ;;  %v156_v24 = vsub.f32 %v147_v15, %v154_v60  ;;  %v192_v7 = vmul.f32 %v3051_v26, %v1732_v33  ;;  %v1760_v57 = vunpack.c.h.bf16 %v1624_v27 }
  0x1e   :  { %v223_v43 = vmul.f32 %v3050_v4, %v1746_v48  ;;  %v1763_v58 = vunpack.c.h.bf16 %v1629_v34  ;;  %v3052_v49 = vperm.slane %v1609_v63, 1  ;;  %v230_v21 = vmul.f32 %v3053_v40, %v1749_v59 }
  0x1f   :  { %v158_v53 = vadd.f32 %v156_v24, %v120_v3  ;;  %v194_v15 = vsub.f32 %v185_v45, %v192_v7  ;;  %v3055_v60 = vperm.slane %v1614_v2, 1  ;;  %v1774_v27 = vunpack.c.h.bf16 %v1634_v35 }
  0x20   :  { %v261_v4 = vmul.f32 %v3052_v49, %v1760_v57  ;;  %v1777_v34 = vunpack.c.h.bf16 %v1651_v50  ;;  %v3056_v26 = vperm.slane %v1646_v54, 1  ;;  %v232_v45 = vsub.f32 %v223_v43, %v230_v21 }
  0x21   :  { %3214 = vst [vmem:[#allocation14_spill] sm:$0xff] %v1774_v27  ;;  %v196_v3 = vadd.f32 %v194_v15, %v158_v53  ;;  %v268_v24 = vmul.f32 %v3055_v60, %v1763_v58  ;;  %v3064_v7 = vperm.slane %v1663_v42, 1  ;;  %v3216_v35 = vperm.slane %v1418_v0, 0 }
  0x22   :  { %3215 = vst [vmem:[#allocation15_spill] sm:$0xff] %v1777_v34  ;;  %v299_v49 = vmul.f32 %v3056_v26, %v1774_v27  ;;  %v3217_v50 = vperm.slane %v1423_v1, 0  ;;  %v3218_v43 = vperm.slane %v1444_v10, 0  ;;  %v3219_v26 = vperm.slane %v1449_v11, 0 }
  0x23   :  { %v45_v40 = vmul.f32 %v3216_v35, %v1439_v9  ;;  %v234_v15 = vadd.f32 %v232_v45, %v196_v3  ;;  %v270_v21 = vsub.f32 %v261_v4, %v268_v24  ;;  %v306_v60 = vmul.f32 %v3064_v7, %v1777_v34 }
  0x24   :  { %v47_v13 = vmul.f32 %v3217_v50, %v1437_v8  ;;  %v83_v53 = vmul.f32 %v3218_v43, %v1478_v22  ;;  %v85_v30 = vmul.f32 %v3219_v26, %v1451_v12  ;;  %v3220_v35 = vperm.slane %v1465_v17, 0 }
  0x25   :  { %v3221_v50 = vperm.slane %v1483_v23, 0  ;;  %v3222_v4 = vperm.slane %v1509_v31, 0  ;;  %v272_v45 = vadd.f32 %v270_v21, %v234_v15  ;;  %v308_v24 = vsub.f32 %v299_v49, %v306_v60 }
  0x26   :  { %v49_v27 = vadd.f32 %v47_v13, %v45_v40  ;;  %v121_v9 = vmul.f32 %v3220_v35, %v1503_v29  ;;  %v87_v43 = vadd.f32 %v85_v30, %v83_v53  ;;  %v3223_v7 = vperm.slane %v1527_v36, 0 }
  0x27   :  { %v123_v8 = vmul.f32 %v3221_v50, %v1500_v28  ;;  %v159_v3 = vmul.f32 %v3222_v4, %v1533_v38  ;;  %v3224_v40 = vperm.slane %v1538_v39, 0  ;;  %v3225_v29 = vperm.slane %v1551_v44, 0 }
  0x28   :  { %v161_v26 = vmul.f32 %v3223_v7, %v1530_v37  ;;  %v3226_v28 = vperm.slane %v1571_v51, 0  ;;  %v310_v15 = vadd.f32 %v308_v24, %v272_v45  ;;  %v89_v49 = vadd.f32 %v87_v43, %v49_v27 }
  0x29   :  { %v125_v13 = vadd.f32 %v123_v8, %v121_v9  ;;  %v197_v35 = vmul.f32 %v3224_v40, %v1580_v55  ;;  %v199_v50 = vmul.f32 %v3225_v29, %v1559_v47  ;;  %v3227_v60 = vperm.slane %v1585_v56, 0 }
  0x2a   :  { %v235_v4 = vmul.f32 %v3226_v28, %v1604_v62  ;;  %v163_v30 = vadd.f32 %v161_v26, %v159_v3  ;;  %v3228_v9 = vperm.slane %v1609_v63, 0  ;;  %v3229_v21 = vperm.slane %v1614_v2, 0  ;;  %320 = vst [vmem:[%s3023_s4 + $0x8] sm:$0xff] %v310_v15 }
  0x2b   :  { %v237_v7 = vmul.f32 %v3227_v60, %v1601_v61  ;;  %v201_v8 = vadd.f32 %v199_v50, %v197_v35  ;;  %v3230_v40 = vperm.slane %v1646_v54, 0  ;;  %v127_v27 = vadd.f32 %v125_v13, %v89_v49  ;;  %v3233_v50 = vld [vmem:[#allocation5_spill] sm:$0xff] }
  0x2c   :  { %v273_v53 = vmul.f32 %v3228_v9, %v1640_v46  ;;  %v275_v29 = vmul.f32 %v3229_v21, %v1637_v41  ;;  %v3231_v45 = vperm.slane %v1663_v42, 0  ;;  %v3232_v43 = vperm.slane %v1418_v0, 1 }
  0x2d   :  { %v311_v28 = vmul.f32 %v3230_v40, %v1672_v20  ;;  %v239_v3 = vadd.f32 %v237_v7, %v235_v4  ;;  %v3234_v60 = vperm.slane %v1423_v1, 1  ;;  %v3235_v21 = vperm.slane %v1444_v10, 1 }
  0x2e   :  { %v313_v24 = vmul.f32 %v3231_v45, %v1669_v6  ;;  %v46_v26 = vmul.f32 %v3232_v43, %v1467_v18  ;;  %v277_v35 = vadd.f32 %v275_v29, %v273_v53  ;;  %v3236_v13 = vperm.slane %v1449_v11, 1 }
  0x2f   :  { %v48_v9 = vmul.f32 %v3234_v60, %v3233_v50  ;;  %v84_v40 = vmul.f32 %v3235_v21, %v1684_v5  ;;  %v165_v15 = vadd.f32 %v163_v30, %v127_v27  ;;  %v3237_v7 = vperm.slane %v1465_v17, 1 }
  0x30   :  { %v86_v4 = vmul.f32 %v3236_v13, %v1469_v19  ;;  %v315_v49 = vadd.f32 %v313_v24, %v311_v28  ;;  %v3238_v53 = vperm.slane %v1483_v23, 1  ;;  %v3239_v10 = vperm.slane %v1509_v31, 1 }
  0x31   :  { %v122_v0 = vmul.f32 %v3237_v7, %v1704_v16  ;;  %v50_v1 = vadd.f32 %v48_v9, %v46_v26  ;;  %v3240_v11 = vperm.slane %v1527_v36, 1  ;;  %v203_v30 = vadd.f32 %v201_v8, %v165_v15  ;;  %v1874_v26 = vld [vmem:[%s3019_s0 + $0x10] ss:$8 sm:$0x3] }
  0x32   :  { %v124_v29 = vmul.f32 %v3238_v53, %v1698_v14  ;;  %v88_v45 = vadd.f32 %v86_v4, %v84_v40  ;;  %v160_v43 = vmul.f32 %v3239_v10, %v1718_v25  ;;  %v3241_v17 = vperm.slane %v1538_v39, 1  ;;  %v1890_v40 = vld [vmem:[%s3019_s0 + $0x11] ss:$8 sm:$0x3] }
  0x33   :  { %v162_v60 = vmul.f32 %v3240_v11, %v1715_v52  ;;  %v3242_v23 = vperm.slane %v1551_v44, 1  ;;  %v3243_v36 = vperm.slane %v1571_v51, 1  ;;  %v3244_v21 = vperm.slane %v1585_v56, 1  ;;  %v1885_v44 = vld [vmem:[%s3020_s1 + $0x10] ss:$8 sm:$0x3] }
  0x34   :  { %v126_v28 = vadd.f32 %v124_v29, %v122_v0  ;;  %v198_v27 = vmul.f32 %v3241_v17, %v1732_v33  ;;  %v90_v31 = vadd.f32 %v88_v45, %v50_v1  ;;  %v241_v13 = vadd.f32 %v239_v3, %v203_v30  ;;  %v1901_v0 = vld [vmem:[%s3020_s1 + $0x11] ss:$8 sm:$0x3]  ;;  %v1906_v53 = vld [vmem:[%s3019_s0 + $0x12] ss:$8 sm:$0x3] }
  0x35   :  { %v200_v24 = vmul.f32 %v3242_v23, %v1729_v32  ;;  %v164_v9 = vadd.f32 %v162_v60, %v160_v43  ;;  %v236_v8 = vmul.f32 %v3243_v36, %v1749_v59  ;;  %v238_v39 = vmul.f32 %v3244_v21, %v1746_v48  ;;  %v3248_v45 = vld [vmem:[#allocation14_spill] sm:$0xff]  ;;  %v1917_v43 = vld [vmem:[%s3020_s1 + $0x12] ss:$8 sm:$0x3]  ;;  %v3251_v21 = vld [vmem:[#allocation3_spill] sm:$0xff] }
  0x36   :  { %v3245_v51 = vperm.slane %v1609_v63, 1  ;;  %v3246_v56 = vperm.slane %v1614_v2, 1  ;;  %v128_v3 = vadd.f32 %v126_v28, %v90_v31  ;;  %v3247_v63 = vperm.slane %v1646_v54, 1  ;;  %v1922_v11 = vld [vmem:[%s3019_s0 + $0x13] ss:$8 sm:$0x3] }
  0x37   :  { %v202_v4 = vadd.f32 %v200_v24, %v198_v27  ;;  %v240_v29 = vadd.f32 %v238_v39, %v236_v8  ;;  %v3249_v2 = vperm.slane %v1663_v42, 1  ;;  %v279_v60 = vadd.f32 %v277_v35, %v241_v13  ;;  %v1929_v42 = vld [vmem:[%s3020_s1 + $0x13] ss:$8 sm:$0x3]  ;;  %v3250_v36 = vld [vmem:[#allocation2_spill] sm:$0xff] }
  0x38   :  { %v274_v15 = vmul.f32 %v3245_v51, %v1763_v58  ;;  %v276_v7 = vmul.f32 %v3246_v56, %v1760_v57  ;;  %v312_v1 = vmul.f32 %v3247_v63, %v1777_v34  ;;  %v3076_v28 = vperm.slane %v1874_v26, 0  ;;  %v1936_v35 = vld [vmem:[%s3019_s0 + $0x14] ss:$8 sm:$0x3] }
  0x39   :  { %v314_v10 = vmul.f32 %v3249_v2, %v3248_v45  ;;  %v3073_v54 = vperm.slane %v1885_v44, 0  ;;  %v166_v17 = vadd.f32 %v164_v9, %v128_v3  ;;  %v3072_v23 = vperm.slane %v1890_v40, 0  ;;  %v1948_v13 = vld [vmem:[%s3020_s1 + $0x14] ss:$8 sm:$0x3]  ;;  %v3252_v3 = vld [vmem:[#allocation7_spill] sm:$0xff] }
  0x3a   :  { %v278_v30 = vadd.f32 %v276_v7, %v274_v15  ;;  %v3069_v24 = vperm.slane %v1901_v0, 0  ;;  %v317_v31 = vadd.f32 %v315_v49, %v279_v60  ;;  %v338_v8 = vmul.f32 %v3076_v28, %v3250_v36  ;;  %v1960_v7 = vld [vmem:[%s3019_s0 + $0x15] ss:$8 sm:$0x3] }
  0x3b   :  { %v316_v27 = vadd.f32 %v314_v10, %v312_v1  ;;  %v345_v39 = vmul.f32 %v3073_v54, %v3251_v21  ;;  %v3070_v9 = vperm.slane %v1906_v53, 0  ;;  %v204_v51 = vadd.f32 %v202_v4, %v166_v17  ;;  %v1973_v10 = vld [vmem:[%s3020_s1 + $0x15] ss:$8 sm:$0x3] }
  0x3c   :  { %v374_v49 = vmul.f32 %v3072_v23, %v1451_v12  ;;  %v381_v15 = vmul.f32 %v3069_v24, %v1478_v22  ;;  %v3071_v56 = vperm.slane %v1917_v43, 0  ;;  %321 = vst [vmem:[%s3024_s5] sm:$0xff] %v317_v31  ;;  %v3074_v1 = vperm.slane %v1922_v11, 0  ;;  %v3253_v24 = vld [vmem:[#allocation8_spill] sm:$0xff] }
  0x3d   :  { %v347_v4 = vsub.f32 %v338_v8, %v345_v39  ;;  %v410_v63 = vmul.f32 %v3070_v9, %v3252_v3  ;;  %v3075_v2 = vperm.slane %v1929_v42, 0  ;;  %v242_v60 = vadd.f32 %v240_v29, %v204_v51  ;;  %v1982_v39 = vld [vmem:[%s3019_s0 + $0x16] ss:$8 sm:$0x3] }
  0x3e   :  { %v383_v17 = vsub.f32 %v374_v49, %v381_v15  ;;  %v417_v31 = vmul.f32 %v3071_v56, %v3253_v24  ;;  %v3077_v8 = vperm.slane %v1936_v35, 0  ;;  %v446_v9 = vmul.f32 %v3074_v1, %v1530_v37  ;;  %v1995_v15 = vld [vmem:[%s3020_s1 + $0x16] ss:$8 sm:$0x3] }
  0x3f   :  { %v453_v29 = vmul.f32 %v3075_v2, %v1533_v38  ;;  %v3082_v51 = vperm.slane %v1948_v13, 0  ;;  %v280_v56 = vadd.f32 %v278_v30, %v242_v60  ;;  %v2003_v2 = vld [vmem:[%s3019_s0 + $0x17] ss:$8 sm:$0x3]  ;;  %v3085_v60 = vperm.slane %v1973_v10, 0 }
  0x40   :  { %v385_v23 = vadd.f32 %v383_v17, %v347_v4  ;;  %v419_v54 = vsub.f32 %v410_v63, %v417_v31  ;;  %v482_v1 = vmul.f32 %v3077_v8, %v1559_v47  ;;  %v2008_v28 = vld [vmem:[%s3020_s1 + $0x17] ss:$8 sm:$0x3]  ;;  %v3254_v4 = vperm.slane %v1960_v7, 0 }
  0x41   :  { %v455_v49 = vsub.f32 %v446_v9, %v453_v29  ;;  %v489_v30 = vmul.f32 %v3082_v51, %v1580_v55  ;;  %v318_v17 = vadd.f32 %v316_v27, %v280_v56  ;;  %v3083_v8 = vperm.slane %v1982_v39, 0 }
  0x42   :  { %v518_v63 = vmul.f32 %v3254_v4, %v1601_v61  ;;  %v421_v31 = vadd.f32 %v419_v54, %v385_v23  ;;  %v3084_v47 = vperm.slane %v1995_v15, 0  ;;  %v525_v9 = vmul.f32 %v3085_v60, %v1604_v62 }
  0x43   :  { %v491_v37 = vsub.f32 %v482_v1, %v489_v30  ;;  %v3086_v29 = vperm.slane %v2003_v2, 0  ;;  %v3087_v51 = vperm.slane %v2008_v28, 0  ;;  %322 = vst [vmem:[%s3024_s5 + $0x8] sm:$0xff] %v318_v17  ;;  %v554_v54 = vmul.f32 %v3083_v8, %v1637_v41 }
  0x44   :  { %v457_v4 = vadd.f32 %v455_v49, %v421_v31  ;;  %v561_v27 = vmul.f32 %v3084_v47, %v1640_v46  ;;  %v3092_v23 = vperm.slane %v1874_v26, 1  ;;  %v527_v56 = vsub.f32 %v518_v63, %v525_v9 }
  0x45   :  { %v590_v1 = vmul.f32 %v3086_v29, %v1669_v6  ;;  %v597_v30 = vmul.f32 %v3087_v51, %v1672_v20  ;;  %v3088_v49 = vperm.slane %v1885_v44, 1  ;;  %v3089_v47 = vperm.slane %v1890_v40, 1 }
  0x46   :  { %v493_v17 = vadd.f32 %v491_v37, %v457_v4  ;;  %v563_v31 = vsub.f32 %v554_v54, %v561_v27  ;;  %v339_v8 = vmul.f32 %v3092_v23, %v3233_v50  ;;  %v3090_v9 = vperm.slane %v1901_v0, 1 }
  0x47   :  { %v599_v60 = vsub.f32 %v590_v1, %v597_v30  ;;  %v346_v63 = vmul.f32 %v3088_v49, %v1467_v18  ;;  %v3091_v29 = vperm.slane %v1906_v53, 1  ;;  %v375_v37 = vmul.f32 %v3089_v47, %v1469_v19 }
  0x48   :  { %v529_v51 = vadd.f32 %v527_v56, %v493_v17  ;;  %v3093_v4 = vperm.slane %v1917_v43, 1  ;;  %v3096_v54 = vperm.slane %v1922_v11, 1  ;;  %v382_v1 = vmul.f32 %v3090_v9, %v1684_v5 }
  0x49   :  { %v348_v27 = vsub.f32 %v339_v8, %v346_v63  ;;  %v411_v30 = vmul.f32 %v3091_v29, %v1698_v14  ;;  %v3107_v49 = vperm.slane %v1929_v42, 1  ;;  %v3104_v8 = vperm.slane %v1936_v35, 1 }
  0x4a   :  { %v565_v56 = vadd.f32 %v563_v31, %v529_v51  ;;  %v418_v17 = vmul.f32 %v3093_v4, %v1704_v16  ;;  %v447_v47 = vmul.f32 %v3096_v54, %v1715_v52  ;;  %v384_v63 = vsub.f32 %v375_v37, %v382_v1 }
  0x4b   :  { %v454_v9 = vmul.f32 %v3107_v49, %v1718_v25  ;;  %v3100_v29 = vperm.slane %v1948_v13, 1  ;;  %v3099_v23 = vperm.slane %v1960_v7, 1  ;;  %v483_v4 = vmul.f32 %v3104_v8, %v1729_v32 }
  0x4c   :  { %v601_v51 = vadd.f32 %v599_v60, %v565_v56  ;;  %v420_v31 = vsub.f32 %v411_v30, %v418_v17  ;;  %v3101_v14 = vperm.slane %v1973_v10, 1  ;;  %v386_v54 = vadd.f32 %v384_v63, %v348_v27 }
  0x4d   :  { %v456_v52 = vsub.f32 %v447_v47, %v454_v9  ;;  %v490_v37 = vmul.f32 %v3100_v29, %v1732_v33  ;;  %v519_v1 = vmul.f32 %v3099_v23, %v1746_v48  ;;  %v3102_v30 = vperm.slane %v1982_v39, 1 }
  0x4e   :  { %1313 = vst [vmem:[%s3023_s4 + $0x10] sm:$0xff] %v601_v51  ;;  %v526_v60 = vmul.f32 %v3101_v14, %v1749_v59  ;;  %v3103_v47 = vperm.slane %v1995_v15, 1  ;;  %v3106_v9 = vperm.slane %v2003_v2, 1  ;;  %v422_v27 = vadd.f32 %v420_v31, %v386_v54 }
  0x4f   :  { %v492_v56 = vsub.f32 %v483_v4, %v490_v37  ;;  %v3105_v17 = vperm.slane %v2008_v28, 1  ;;  %v3255_v63 = vperm.slane %v1874_v26, 0  ;;  %v555_v51 = vmul.f32 %v3102_v30, %v1760_v57 }
  0x50   :  { %v528_v29 = vsub.f32 %v519_v1, %v526_v60  ;;  %v562_v14 = vmul.f32 %v3103_v47, %v1763_v58  ;;  %v591_v54 = vmul.f32 %v3106_v9, %v3248_v45  ;;  %v458_v4 = vadd.f32 %v456_v52, %v422_v27 }
  0x51   :  { %v351_v23 = vmul.f32 %v3255_v63, %v3251_v21  ;;  %v598_v31 = vmul.f32 %v3105_v17, %v1777_v34  ;;  %v3256_v37 = vperm.slane %v1885_v44, 0  ;;  %v3257_v60 = vperm.slane %v1890_v40, 0  ;;  %v3265_v34 = vld [vmem:[#allocation10_spill] sm:$0xff] }
  0x52   :  { %v564_v30 = vsub.f32 %v555_v51, %v562_v14  ;;  %v3258_v47 = vperm.slane %v1901_v0, 0  ;;  %v3259_v52 = vperm.slane %v1906_v53, 0  ;;  %v3260_v17 = vperm.slane %v1917_v43, 0 }
  0x53   :  { %v353_v1 = vmul.f32 %v3256_v37, %v3250_v36  ;;  %v387_v63 = vmul.f32 %v3257_v60, %v1478_v22  ;;  %v494_v49 = vadd.f32 %v492_v56, %v458_v4  ;;  %v600_v21 = vsub.f32 %v591_v54, %v598_v31  ;;  %v3262_v22 = vld [vmem:[#allocation9_spill] sm:$0xff] }
  0x54   :  { %v389_v8 = vmul.f32 %v3258_v47, %v1451_v12  ;;  %v423_v27 = vmul.f32 %v3259_v52, %v3253_v24  ;;  %v425_v9 = vmul.f32 %v3260_v17, %v3252_v3  ;;  %v3261_v36 = vperm.slane %v1922_v11, 0 }
  0x55   :  { %v355_v37 = vadd.f32 %v353_v1, %v351_v23  ;;  %v3263_v47 = vperm.slane %v1929_v42, 0  ;;  %v3264_v52 = vperm.slane %v1936_v35, 0  ;;  %v530_v45 = vadd.f32 %v528_v29, %v494_v49 }
  0x56   :  { %v459_v60 = vmul.f32 %v3261_v36, %v1533_v38  ;;  %v391_v14 = vadd.f32 %v389_v8, %v387_v63  ;;  %v427_v51 = vadd.f32 %v425_v9, %v423_v27  ;;  %v3266_v56 = vperm.slane %v1948_v13, 0 }
  0x57   :  { %v461_v12 = vmul.f32 %v3263_v47, %v3262_v22  ;;  %v495_v24 = vmul.f32 %v3264_v52, %v1580_v55  ;;  %v3267_v23 = vperm.slane %v1960_v7, 0  ;;  %v3268_v36 = vperm.slane %v1973_v10, 0 }
  0x58   :  { %v497_v17 = vmul.f32 %v3266_v56, %v3265_v34  ;;  %v393_v9 = vadd.f32 %v391_v14, %v355_v37  ;;  %v3269_v31 = vperm.slane %v1982_v39, 0  ;;  %v3270_v29 = vperm.slane %v1995_v15, 0 }
  0x59   :  { %v531_v54 = vmul.f32 %v3267_v23, %v1604_v62  ;;  %v533_v8 = vmul.f32 %v3268_v36, %v1601_v61  ;;  %v463_v4 = vadd.f32 %v461_v12, %v459_v60  ;;  %v566_v63 = vadd.f32 %v564_v30, %v530_v45 }
  0x5a   :  { %v567_v1 = vmul.f32 %v3269_v31, %v1640_v46  ;;  %v569_v49 = vmul.f32 %v3270_v29, %v1637_v41  ;;  %v499_v27 = vadd.f32 %v497_v17, %v495_v24  ;;  %v3271_v52 = vperm.slane %v2003_v2, 0 }
  0x5b   :  { %v535_v47 = vadd.f32 %v533_v8, %v531_v54  ;;  %v429_v23 = vadd.f32 %v427_v51, %v393_v9  ;;  %v3272_v12 = vperm.slane %v2008_v28, 0  ;;  %v3273_v60 = vperm.slane %v1874_v26, 1 }
  0x5c   :  { %v603_v56 = vmul.f32 %v3271_v52, %v1672_v20  ;;  %v571_v62 = vadd.f32 %v569_v49, %v567_v1  ;;  %v602_v36 = vadd.f32 %v600_v21, %v566_v63  ;;  %v3274_v45 = vperm.slane %v1885_v44, 1  ;;  %v3278_v1 = vld [vmem:[#allocation12_spill] sm:$0xff] }
  0x5d   :  { %v605_v37 = vmul.f32 %v3272_v12, %v1669_v6  ;;  %v352_v14 = vmul.f32 %v3273_v60, %v1467_v18  ;;  %v3275_v30 = vperm.slane %v1890_v40, 1  ;;  %v3276_v51 = vperm.slane %v1901_v0, 1  ;;  %v2190_v60 = vld [vmem:[%s3019_s0 + $0x20] ss:$8 sm:$0x3] }
  0x5e   :  { %v354_v24 = vmul.f32 %v3274_v45, %v3233_v50  ;;  %v465_v8 = vadd.f32 %v463_v4, %v429_v23  ;;  %v3277_v31 = vperm.slane %v1906_v53, 1  ;;  %v3279_v21 = vperm.slane %v1917_v43, 1  ;;  %1314 = vst [vmem:[%s3023_s4 + $0x18] sm:$0xff] %v602_v36  ;;  %v3281_v4 = vld [vmem:[#allocation13_spill] sm:$0xff] }
  0x5f   :  { %v388_v17 = vmul.f32 %v3275_v30, %v1684_v5  ;;  %v390_v54 = vmul.f32 %v3276_v51, %v1469_v19  ;;  %v607_v9 = vadd.f32 %v605_v37, %v603_v56  ;;  %v3280_v0 = vperm.slane %v1922_v11, 1  ;;  %v2206_v45 = vld [vmem:[%s3019_s0 + $0x21] ss:$8 sm:$0x3] }
  0x60   :  { %v424_v26 = vmul.f32 %v3277_v31, %v1704_v16  ;;  %v426_v29 = vmul.f32 %v3279_v21, %v3278_v1  ;;  %v356_v44 = vadd.f32 %v354_v24, %v352_v14  ;;  %v3282_v63 = vperm.slane %v1929_v42, 1 }
  0x61   :  { %v392_v40 = vadd.f32 %v390_v54, %v388_v17  ;;  %v460_v49 = vmul.f32 %v3280_v0, %v1718_v25  ;;  %v501_v53 = vadd.f32 %v499_v27, %v465_v8  ;;  %v3283_v43 = vperm.slane %v1936_v35, 1  ;;  %v2217_v54 = vld [vmem:[%s3020_s1 + $0x21] ss:$8 sm:$0x3] }
  0x62   :  { %v462_v52 = vmul.f32 %v3282_v63, %v3281_v4  ;;  %v428_v56 = vadd.f32 %v426_v29, %v424_v26  ;;  %v3284_v12 = vperm.slane %v1948_v13, 1  ;;  %v3285_v42 = vperm.slane %v1960_v7, 1  ;;  %v2201_v13 = vld [vmem:[%s3020_s1 + $0x20] ss:$8 sm:$0x3] }
  0x63   :  { %v496_v23 = vmul.f32 %v3283_v43, %v1732_v33  ;;  %v394_v11 = vadd.f32 %v392_v40, %v356_v44  ;;  %v3286_v36 = vperm.slane %v1973_v10, 1  ;;  %v537_v24 = vadd.f32 %v535_v47, %v501_v53  ;;  %v2222_v8 = vld [vmem:[%s3019_s0 + $0x22] ss:$8 sm:$0x3] }
  0x64   :  { %v498_v37 = vmul.f32 %v3284_v12, %v1729_v32  ;;  %v464_v14 = vadd.f32 %v462_v52, %v460_v49  ;;  %v532_v27 = vmul.f32 %v3285_v42, %v1749_v59  ;;  %v3287_v7 = vperm.slane %v1982_v39, 1  ;;  %v3289_v26 = vld [vmem:[#allocation15_spill] sm:$0xff]  ;;  %v3291_v29 = vld [vmem:[#allocation14_spill] sm:$0xff] }
  0x65   :  { %v534_v35 = vmul.f32 %v3286_v36, %v1746_v48  ;;  %v3288_v10 = vperm.slane %v1995_v15, 1  ;;  %v430_v47 = vadd.f32 %v428_v56, %v394_v11  ;;  %v3290_v39 = vperm.slane %v2003_v2, 1  ;;  %v2233_v40 = vld [vmem:[%s3020_s1 + $0x22] ss:$8 sm:$0x3] }
  0x66   :  { %v500_v30 = vadd.f32 %v498_v37, %v496_v23  ;;  %v568_v17 = vmul.f32 %v3287_v7, %v1763_v58  ;;  %v3292_v15 = vperm.slane %v2008_v28, 1  ;;  %v2238_v0 = vld [vmem:[%s3019_s0 + $0x23] ss:$8 sm:$0x3]  ;;  %v573_v49 = vadd.f32 %v571_v62, %v537_v24  ;;  %v3295_v24 = vld [vmem:[#allocation4_spill] sm:$0xff] }
  0x67   :  { %v570_v51 = vmul.f32 %v3288_v10, %v1760_v57  ;;  %v536_v31 = vadd.f32 %v534_v35, %v532_v27  ;;  %v604_v21 = vmul.f32 %v3290_v39, %v3289_v26  ;;  %v3127_v52 = vperm.slane %v2190_v60, 0  ;;  %v2245_v28 = vld [vmem:[%s3020_s1 + $0x23] ss:$8 sm:$0x3] }
  0x68   :  { %v606_v44 = vmul.f32 %v3292_v15, %v3291_v29  ;;  %v3126_v2 = vperm.slane %v2201_v13, 0  ;;  %v466_v53 = vadd.f32 %v464_v14, %v430_v47  ;;  %v3123_v43 = vperm.slane %v2206_v45, 0  ;;  %v2252_v62 = vld [vmem:[%s3019_s0 + $0x24] ss:$8 sm:$0x3] }
  0x69   :  { %v572_v63 = vadd.f32 %v570_v51, %v568_v17  ;;  %v3122_v23 = vperm.slane %v2217_v54, 0  ;;  %v609_v12 = vadd.f32 %v607_v9, %v573_v49  ;;  %v3293_v37 = vld [vmem:[#allocation2_spill] sm:$0xff]  ;;  %v3294_v42 = vld [vmem:[#allocation3_spill] sm:$0xff]  ;;  %v3120_v14 = vperm.slane %v2222_v8, 0 }
  0x6a   :  { %v608_v56 = vadd.f32 %v606_v44, %v604_v21  ;;  %v632_v11 = vmul.f32 %v3127_v52, %v3293_v37  ;;  %v639_v27 = vmul.f32 %v3126_v2, %v3294_v42  ;;  %v2264_v36 = vld [vmem:[%s3020_s1 + $0x24] ss:$8 sm:$0x3]  ;;  %v502_v35 = vadd.f32 %v500_v30, %v466_v53  ;;  %v2276_v51 = vld [vmem:[%s3019_s0 + $0x25] ss:$8 sm:$0x3] }
  0x6b   :  { %v668_v9 = vmul.f32 %v3123_v43, %v3295_v24  ;;  %v3296_v7 = vld [vmem:[#allocation6_spill] sm:$0xff]  ;;  %v3121_v10 = vperm.slane %v2233_v40, 0  ;;  %1315 = vst [vmem:[%s3024_s5 + $0x10] sm:$0xff] %v609_v12  ;;  %v704_v47 = vmul.f32 %v3120_v14, %v3252_v3  ;;  %v3124_v39 = vperm.slane %v2238_v0, 0  ;;  %v3297_v53 = vld [vmem:[#allocation8_spill] sm:$0xff] }
  0x6c   :  { %v675_v17 = vmul.f32 %v3122_v23, %v3296_v7  ;;  %v641_v30 = vsub.f32 %v632_v11, %v639_v27  ;;  %v3125_v21 = vperm.slane %v2245_v28, 0  ;;  %v2289_v15 = vld [vmem:[%s3020_s1 + $0x25] ss:$8 sm:$0x3]  ;;  %v538_v44 = vadd.f32 %v536_v31, %v502_v35 }
  0x6d   :  { %v711_v12 = vmul.f32 %v3121_v10, %v3297_v53  ;;  %v3128_v11 = vperm.slane %v2252_v62, 0  ;;  %v2298_v27 = vld [vmem:[%s3019_s0 + $0x26] ss:$8 sm:$0x3]  ;;  %v740_v14 = vmul.f32 %v3124_v39, %v3262_v22  ;;  %v3131_v35 = vperm.slane %v2264_v36, 0 }
  0x6e   :  { %v677_v49 = vsub.f32 %v668_v9, %v675_v17  ;;  %v747_v31 = vmul.f32 %v3125_v21, %v1533_v38  ;;  %v3132_v9 = vperm.slane %v2276_v51, 0  ;;  %v2311_v17 = vld [vmem:[%s3020_s1 + $0x26] ss:$8 sm:$0x3]  ;;  %v574_v10 = vadd.f32 %v572_v63, %v538_v44 }
  0x6f   :  { %v713_v43 = vsub.f32 %v704_v47, %v711_v12  ;;  %v776_v39 = vmul.f32 %v3128_v11, %v3265_v34  ;;  %v2319_v21 = vld [vmem:[%s3019_s0 + $0x27] ss:$8 sm:$0x3]  ;;  %v783_v63 = vmul.f32 %v3131_v35, %v1580_v55  ;;  %v3135_v47 = vperm.slane %v2289_v15, 0 }
  0x70   :  { %v679_v23 = vadd.f32 %v677_v49, %v641_v30  ;;  %v2324_v2 = vld [vmem:[%s3020_s1 + $0x27] ss:$8 sm:$0x3]  ;;  %v749_v52 = vsub.f32 %v740_v14, %v747_v31  ;;  %v812_v30 = vmul.f32 %v3132_v9, %v1601_v61  ;;  %v610_v44 = vadd.f32 %v608_v56, %v574_v10 }
  0x71   :  { %v3133_v12 = vperm.slane %v2298_v27, 0  ;;  %v3134_v11 = vperm.slane %v2311_v17, 0  ;;  %v785_v34 = vsub.f32 %v776_v39, %v783_v63  ;;  %v3298_v22 = vld [vmem:[#allocation11_spill] sm:$0xff]  ;;  %v3136_v31 = vperm.slane %v2319_v21, 0 }
  0x72   :  { %v715_v49 = vadd.f32 %v713_v43, %v679_v23  ;;  %v819_v14 = vmul.f32 %v3135_v47, %v3298_v22  ;;  %v3137_v35 = vperm.slane %v2324_v2, 0  ;;  %1316 = vst [vmem:[%s3024_s5 + $0x18] sm:$0xff] %v610_v44  ;;  %v3142_v23 = vperm.slane %v2190_v60, 1 }
  0x73   :  { %v848_v56 = vmul.f32 %v3133_v12, %v1637_v41  ;;  %v855_v43 = vmul.f32 %v3134_v11, %v1640_v46  ;;  %v884_v39 = vmul.f32 %v3136_v31, %v1669_v6  ;;  %v3139_v11 = vperm.slane %v2206_v45, 1 }
  0x74   :  { %v751_v9 = vadd.f32 %v749_v52, %v715_v49  ;;  %v821_v10 = vsub.f32 %v812_v30, %v819_v14  ;;  %v891_v63 = vmul.f32 %v3137_v35, %v1672_v20  ;;  %v3138_v52 = vperm.slane %v2201_v13, 1 }
  0x75   :  { %v857_v49 = vsub.f32 %v848_v56, %v855_v43  ;;  %v633_v12 = vmul.f32 %v3142_v23, %v3233_v50  ;;  %v3140_v14 = vperm.slane %v2217_v54, 1  ;;  %v3141_v31 = vperm.slane %v2222_v8, 1 }
  0x76   :  { %v787_v44 = vadd.f32 %v785_v34, %v751_v9  ;;  %v893_v47 = vsub.f32 %v884_v39, %v891_v63  ;;  %v640_v30 = vmul.f32 %v3138_v52, %v1467_v18  ;;  %v669_v34 = vmul.f32 %v3139_v11, %v1469_v19 }
  0x77   :  { %v3143_v9 = vperm.slane %v2233_v40, 1  ;;  %v3145_v56 = vperm.slane %v2238_v0, 1  ;;  %v676_v39 = vmul.f32 %v3140_v14, %v1684_v5  ;;  %v705_v63 = vmul.f32 %v3141_v31, %v3278_v1 }
  0x78   :  { %v823_v35 = vadd.f32 %v821_v10, %v787_v44  ;;  %v642_v43 = vsub.f32 %v633_v12, %v640_v30  ;;  %v3155_v52 = vperm.slane %v2245_v28, 1  ;;  %v3154_v12 = vperm.slane %v2252_v62, 1 }
  0x79   :  { %v712_v44 = vmul.f32 %v3143_v9, %v1704_v16  ;;  %v741_v11 = vmul.f32 %v3145_v56, %v3281_v4  ;;  %v678_v30 = vsub.f32 %v669_v34, %v676_v39  ;;  %v3148_v31 = vperm.slane %v2264_v36, 1 }
  0x7a   :  { %v859_v10 = vadd.f32 %v857_v49, %v823_v35  ;;  %v748_v14 = vmul.f32 %v3155_v52, %v1718_v25  ;;  %v3147_v23 = vperm.slane %v2276_v51, 1  ;;  %v777_v9 = vmul.f32 %v3154_v12, %v1729_v32 }
  0x7b   :  { %v714_v49 = vsub.f32 %v705_v63, %v712_v44  ;;  %v3149_v1 = vperm.slane %v2289_v15, 1  ;;  %v680_v56 = vadd.f32 %v678_v30, %v642_v43  ;;  %v784_v34 = vmul.f32 %v3148_v31, %v1732_v33 }
  0x7c   :  { %v895_v35 = vadd.f32 %v893_v47, %v859_v10  ;;  %v750_v4 = vsub.f32 %v741_v11, %v748_v14  ;;  %v813_v39 = vmul.f32 %v3147_v23, %v1746_v48  ;;  %v3151_v63 = vperm.slane %v2298_v27, 1 }
  0x7d   :  { %v820_v47 = vmul.f32 %v3149_v1, %v1749_v59  ;;  %v3150_v11 = vperm.slane %v2311_v17, 1  ;;  %v3153_v14 = vperm.slane %v2319_v21, 1  ;;  %v716_v43 = vadd.f32 %v714_v49, %v680_v56 }
  0x7e   :  { %1347 = vst [vmem:[%s3023_s4 + $0x20] sm:$0xff] %v895_v35  ;;  %v786_v10 = vsub.f32 %v777_v9, %v784_v34  ;;  %v3152_v44 = vperm.slane %v2324_v2, 1  ;;  %v3299_v30 = vperm.slane %v2190_v60, 0  ;;  %v849_v35 = vmul.f32 %v3151_v63, %v1760_v57 }
  0x7f   :  { %v822_v31 = vsub.f32 %v813_v39, %v820_v47  ;;  %v856_v1 = vmul.f32 %v3150_v11, %v1763_v58  ;;  %v885_v56 = vmul.f32 %v3153_v14, %v3291_v29  ;;  %v752_v9 = vadd.f32 %v750_v4, %v716_v43 }
  0x80   :  { %v645_v23 = vmul.f32 %v3299_v30, %v3294_v42  ;;  %v892_v49 = vmul.f32 %v3152_v44, %v3289_v26  ;;  %v3300_v42 = vperm.slane %v2201_v13, 0  ;;  %v3301_v39 = vperm.slane %v2206_v45, 0  ;;  %v3309_v26 = vld [vmem:[#allocation10_spill] sm:$0xff] }
  0x81   :  { %v858_v30 = vsub.f32 %v849_v35, %v856_v1  ;;  %v3302_v11 = vperm.slane %v2217_v54, 0  ;;  %v3303_v4 = vperm.slane %v2222_v8, 0  ;;  %v3304_v44 = vperm.slane %v2233_v40, 0 }
  0x82   :  { %v647_v34 = vmul.f32 %v3300_v42, %v3293_v37  ;;  %v681_v47 = vmul.f32 %v3301_v39, %v3296_v7  ;;  %v788_v12 = vadd.f32 %v786_v10, %v752_v9  ;;  %v894_v52 = vsub.f32 %v885_v56, %v892_v49  ;;  %v3306_v39 = vld [vmem:[#allocation9_spill] sm:$0xff] }
  0x83   :  { %v683_v63 = vmul.f32 %v3302_v11, %v3295_v24  ;;  %v717_v43 = vmul.f32 %v3303_v4, %v3297_v53  ;;  %v719_v14 = vmul.f32 %v3304_v44, %v3252_v3  ;;  %v3305_v42 = vperm.slane %v2238_v0, 0 }
  0x84   :  { %v649_v37 = vadd.f32 %v647_v34, %v645_v23  ;;  %v3307_v24 = vperm.slane %v2245_v28, 0  ;;  %v3308_v53 = vperm.slane %v2252_v62, 0  ;;  %v824_v29 = vadd.f32 %v822_v31, %v788_v12 }
  0x85   :  { %v753_v7 = vmul.f32 %v3305_v42, %v1533_v38  ;;  %v685_v1 = vadd.f32 %v683_v63, %v681_v47  ;;  %v721_v35 = vadd.f32 %v719_v14, %v717_v43  ;;  %v3310_v3 = vperm.slane %v2264_v36, 0 }
  0x86   :  { %v755_v11 = vmul.f32 %v3307_v24, %v3306_v39  ;;  %v789_v4 = vmul.f32 %v3308_v53, %v1580_v55  ;;  %v3311_v23 = vperm.slane %v2276_v51, 0  ;;  %v3312_v38 = vperm.slane %v2289_v15, 0 }
  0x87   :  { %v791_v10 = vmul.f32 %v3310_v3, %v3309_v26  ;;  %v687_v14 = vadd.f32 %v685_v1, %v649_v37  ;;  %v3313_v9 = vperm.slane %v2298_v27, 0  ;;  %v3314_v55 = vperm.slane %v2311_v17, 0 }
  0x88   :  { %v825_v44 = vmul.f32 %v3311_v23, %v3298_v22  ;;  %v827_v63 = vmul.f32 %v3312_v38, %v1601_v61  ;;  %v757_v56 = vadd.f32 %v755_v11, %v753_v7  ;;  %v860_v12 = vadd.f32 %v858_v30, %v824_v29 }
  0x89   :  { %v861_v49 = vmul.f32 %v3313_v9, %v1640_v46  ;;  %v863_v31 = vmul.f32 %v3314_v55, %v1637_v41  ;;  %v793_v26 = vadd.f32 %v791_v10, %v789_v4  ;;  %v3315_v22 = vperm.slane %v2319_v21, 0  ;;  %v2538_v9 = vld [vmem:[%s3019_s0 + $0x31] ss:$8 sm:$0x3] }
  0x8a   :  { %v829_v34 = vadd.f32 %v827_v63, %v825_v44  ;;  %v723_v43 = vadd.f32 %v721_v35, %v687_v14  ;;  %v3316_v61 = vperm.slane %v2324_v2, 0  ;;  %v3317_v46 = vperm.slane %v2190_v60, 1  ;;  %v2512_v14 = vld [vmem:[%s3019_s0 + $0x30] ss:$8 sm:$0x3] }
  0x8b   :  { %v897_v47 = vmul.f32 %v3315_v22, %v1672_v20  ;;  %v865_v42 = vadd.f32 %v863_v31, %v861_v49  ;;  %v896_v1 = vadd.f32 %v894_v52, %v860_v12  ;;  %v3318_v41 = vperm.slane %v2201_v13, 1  ;;  %v3333_v31 = vld [vmem:[#allocation15_spill] sm:$0xff]  ;;  %v3335_v12 = vld [vmem:[#allocation14_spill] sm:$0xff] }
  0x8c   :  { %v899_v37 = vmul.f32 %v3316_v61, %v1669_v6  ;;  %v646_v7 = vmul.f32 %v3317_v46, %v1467_v18  ;;  %v3319_v30 = vperm.slane %v2206_v45, 1  ;;  %v3320_v20 = vperm.slane %v2217_v54, 1  ;;  %v3322_v18 = vld [vmem:[#allocation12_spill] sm:$0xff]  ;;  %v3325_v45 = vld [vmem:[#allocation13_spill] sm:$0xff]  ;;  %v2559_v22 = vld [vmem:[%s3022_s3 + $0x8] sm:$0xff] }
  0x8d   :  { %v648_v29 = vmul.f32 %v3318_v41, %v3233_v50  ;;  %v759_v24 = vadd.f32 %v757_v56, %v723_v43  ;;  %v3321_v6 = vperm.slane %v2222_v8, 1  ;;  %v3323_v52 = vperm.slane %v2233_v40, 1  ;;  %1348 = vst [vmem:[%s3023_s4 + $0x28] sm:$0xff] %v896_v1  ;;  %v2533_v56 = vld [vmem:[%s3020_s1 + $0x30] ss:$8 sm:$0x3] }
  0x8e   :  { %v682_v39 = vmul.f32 %v3319_v30, %v1684_v5  ;;  %v684_v35 = vmul.f32 %v3320_v20, %v1469_v19  ;;  %v901_v11 = vadd.f32 %v899_v37, %v897_v47  ;;  %v3324_v13 = vperm.slane %v2238_v0, 1  ;;  %v2566_v61 = vld [vmem:[%s3019_s0 + $0x32] ss:$8 sm:$0x3] }
  0x8f   :  { %v718_v60 = vmul.f32 %v3321_v6, %v1704_v16  ;;  %v720_v53 = vmul.f32 %v3323_v52, %v3322_v18  ;;  %v650_v50 = vadd.f32 %v648_v29, %v646_v7  ;;  %v3326_v54 = vperm.slane %v2245_v28, 1  ;;  %v2571_v37 = vld [vmem:[%s3021_s2 + $0x10] sm:$0xff] }
  0x90   :  { %v686_v5 = vadd.f32 %v684_v35, %v682_v39  ;;  %v754_v19 = vmul.f32 %v3324_v13, %v1718_v25  ;;  %v795_v8 = vadd.f32 %v793_v26, %v759_v24  ;;  %v3327_v40 = vperm.slane %v2252_v62, 1  ;;  %v2549_v26 = vld [vmem:[%s3020_s1 + $0x31] ss:$8 sm:$0x3] }
  0x91   :  { %v756_v4 = vmul.f32 %v3326_v54, %v3325_v45  ;;  %v722_v16 = vadd.f32 %v720_v53, %v718_v60  ;;  %v3328_v10 = vperm.slane %v2264_v36, 1  ;;  %v3329_v0 = vperm.slane %v2276_v51, 1  ;;  %v2578_v41 = vld [vmem:[%s3020_s1 + $0x32] ss:$8 sm:$0x3] }
  0x92   :  { %v790_v3 = vmul.f32 %v3327_v40, %v1732_v33  ;;  %v688_v44 = vadd.f32 %v686_v5, %v650_v50  ;;  %v3330_v28 = vperm.slane %v2289_v15, 1  ;;  %v2517_v33 = vld [vmem:[%s3021_s2] sm:$0xff]  ;;  %v3332_v51 = vperm.slane %v2311_v17, 1  ;;  %v2583_v29 = vld [vmem:[%s3022_s3 + $0x10] sm:$0xff]  ;;  %v2610_v53 = vld [vmem:[%s3021_s2 + $0x18] sm:$0xff] }
  0x93   :  { %v792_v23 = vmul.f32 %v3328_v10, %v1729_v32  ;;  %v758_v38 = vadd.f32 %v756_v4, %v754_v19  ;;  %v826_v25 = vmul.f32 %v3329_v0, %v1749_v59  ;;  %v2522_v32 = vld [vmem:[%s3022_s3] sm:$0xff]  ;;  %v831_v59 = vadd.f32 %v829_v34, %v795_v8  ;;  %v2554_v34 = vld [vmem:[%s3021_s2 + $0x8] sm:$0xff]  ;;  %v2591_v24 = vld [vmem:[%s3019_s0 + $0x33] ss:$8 sm:$0x3] }
  0x94   :  { %v828_v63 = vmul.f32 %v3330_v28, %v1746_v48  ;;  %v3331_v48 = vperm.slane %v2298_v27, 1  ;;  %v864_v15 = vmul.f32 %v3332_v51, %v1760_v57  ;;  %v724_v49 = vadd.f32 %v722_v16, %v688_v44  ;;  %v2605_v52 = vld [vmem:[%s3020_s1 + $0x33] ss:$8 sm:$0x3]  ;;  %v2645_v10 = vld [vmem:[%s3021_s2 + $0x20] sm:$0xff]  ;;  %v2677_v51 = vld [vmem:[%s3021_s2 + $0x28] sm:$0xff] }
  0x95   :  { %v794_v62 = vadd.f32 %v792_v23, %v790_v3  ;;  %v3334_v27 = vperm.slane %v2319_v21, 1  ;;  %v3336_v17 = vperm.slane %v2324_v2, 1  ;;  %v867_v21 = vadd.f32 %v865_v42, %v831_v59  ;;  %v2615_v50 = vld [vmem:[%s3022_s3 + $0x18] sm:$0xff]  ;;  %v2650_v23 = vld [vmem:[%s3022_s3 + $0x20] sm:$0xff] }
  0x96   :  { %v862_v36 = vmul.f32 %v3331_v48, %v1763_v58  ;;  %v830_v55 = vadd.f32 %v828_v63, %v826_v25  ;;  %v916_v2 = vunpack.c.l.bf16 %v2517_v33  ;;  %v919_v43 = vunpack.c.l.bf16 %v2522_v32  ;;  %v2630_v54 = vld [vmem:[%s3019_s0 + $0x34] ss:$8 sm:$0x3]  ;;  %v2662_v28 = vld [vmem:[%s3019_s0 + $0x35] ss:$8 sm:$0x3] }
  0x97   :  { %v898_v58 = vmul.f32 %v3334_v27, %v3333_v31  ;;  %v900_v57 = vmul.f32 %v3336_v17, %v3335_v12  ;;  %v760_v46 = vadd.f32 %v758_v38, %v724_v49  ;;  %v922_v1 = vperm.slane %v2512_v14, 0  ;;  %v2640_v3 = vld [vmem:[%s3020_s1 + $0x34] ss:$8 sm:$0x3] }
  0x98   :  { %v866_v47 = vadd.f32 %v864_v15, %v862_v36  ;;  %v929_v42 = vperm.slane %v2533_v56, 0  ;;  %v903_v30 = vadd.f32 %v901_v11, %v867_v21  ;;  %v952_v39 = vunpack.c.l.bf16 %v2554_v34  ;;  %v2672_v36 = vld [vmem:[%s3020_s1 + $0x35] ss:$8 sm:$0x3]  ;;  %v2682_v15 = vld [vmem:[%s3022_s3 + $0x28] sm:$0xff] }
  0x99   :  { %v902_v7 = vadd.f32 %v900_v57, %v898_v58  ;;  %v955_v20 = vunpack.c.l.bf16 %v2559_v22  ;;  %v958_v35 = vperm.slane %v2538_v9, 0  ;;  %v796_v6 = vadd.f32 %v794_v62, %v760_v46  ;;  %v2694_v58 = vld [vmem:[%s3019_s0 + $0x36] ss:$8 sm:$0x3] }
  0x9a   :  { %v926_v60 = vmul.f32 %v922_v1, %v916_v2  ;;  %v933_v11 = vmul.f32 %v929_v42, %v919_v43  ;;  %v965_v18 = vperm.slane %v2549_v26, 0  ;;  %1349 = vst [vmem:[%s3024_s5 + $0x20] sm:$0xff] %v903_v30  ;;  %v988_v13 = vunpack.c.l.bf16 %v2571_v37  ;;  %v2708_v46 = vld [vmem:[%s3021_s2 + $0x30] sm:$0xff] }
  0x9b   :  { %v962_v5 = vmul.f32 %v958_v35, %v952_v39  ;;  %v991_v19 = vunpack.c.l.bf16 %v2583_v29  ;;  %v994_v45 = vperm.slane %v2566_v61, 0  ;;  %v832_v4 = vadd.f32 %v830_v55, %v796_v6 }
  0x9c   :  { %v935_v8 = vsub.f32 %v926_v60, %v933_v11  ;;  %v969_v16 = vmul.f32 %v965_v18, %v955_v20  ;;  %v1001_v40 = vperm.slane %v2578_v41, 0  ;;  %v3163_v38 = vunpack.c.l.bf16 %v2610_v53 }
  0x9d   :  { %v998_v44 = vmul.f32 %v994_v45, %v988_v13  ;;  %v1027_v0 = vunpack.c.l.bf16 %v2615_v50  ;;  %v3194_v25 = vperm.slane %v2591_v24, 0  ;;  %v868_v63 = vadd.f32 %v866_v47, %v832_v4  ;;  %v2703_v47 = vld [vmem:[%s3020_s1 + $0x36] ss:$8 sm:$0x3] }
  0x9e   :  { %v971_v59 = vsub.f32 %v962_v5, %v969_v16  ;;  %v1005_v62 = vmul.f32 %v1001_v40, %v991_v19  ;;  %v3162_v48 = vperm.slane %v2605_v52, 0  ;;  %v3158_v55 = vunpack.c.l.bf16 %v2645_v10  ;;  %v2725_v5 = vld [vmem:[%s3019_s0 + $0x37] ss:$8 sm:$0x3] }
  0x9f   :  { %v1034_v49 = vmul.f32 %v3194_v25, %v3163_v38  ;;  %v3161_v31 = vunpack.c.l.bf16 %v2650_v23  ;;  %v3160_v27 = vperm.slane %v2630_v54, 0  ;;  %v904_v12 = vadd.f32 %v902_v7, %v868_v63  ;;  %v2713_v7 = vld [vmem:[%s3022_s3 + $0x30] sm:$0xff]  ;;  %v2735_v63 = vld [vmem:[%s3021_s2 + $0x38] sm:$0xff] }
  0xa0   :  { %v973_v17 = vadd.f32 %v971_v59, %v935_v8  ;;  %v1007_v57 = vsub.f32 %v998_v44, %v1005_v62  ;;  %v1041_v21 = vmul.f32 %v3162_v48, %v1027_v0  ;;  %v3159_v6 = vperm.slane %v2640_v3, 0  ;;  %v2740_v59 = vld [vmem:[%s3022_s3 + $0x38] sm:$0xff] }
  0xa1   :  { %v1070_v30 = vmul.f32 %v3160_v27, %v3158_v55  ;;  %v3164_v60 = vunpack.c.l.bf16 %v2677_v51  ;;  %v3167_v11 = vunpack.c.l.bf16 %v2682_v15  ;;  %1350 = vst [vmem:[%s3024_s5 + $0x28] sm:$0xff] %v904_v12  ;;  %v3166_v16 = vperm.slane %v2662_v28, 0 }
  0xa2   :  { %v1009_v4 = vadd.f32 %v1007_v57, %v973_v17  ;;  %v1043_v8 = vsub.f32 %v1034_v49, %v1041_v21  ;;  %v3165_v44 = vperm.slane %v2672_v36, 0  ;;  %v1077_v62 = vmul.f32 %v3159_v6, %v3161_v31  ;;  %v2752_v57 = vld [vmem:[%s3020_s1 + $0x37] ss:$8 sm:$0x3] }
  0xa3   :  { %v3168_v49 = vunpack.c.l.bf16 %v2708_v46  ;;  %v3171_v12 = vunpack.c.l.bf16 %v2713_v7  ;;  %v3169_v17 = vperm.slane %v2694_v58, 0  ;;  %v1106_v55 = vmul.f32 %v3166_v16, %v3164_v60 }
  0xa4   :  { %v1045_v21 = vadd.f32 %v1043_v8, %v1009_v4  ;;  %v1113_v6 = vmul.f32 %v3165_v44, %v3167_v11  ;;  %v3170_v27 = vperm.slane %v2703_v47, 0  ;;  %v1079_v31 = vsub.f32 %v1070_v30, %v1077_v62 }
  0xa5   :  { %v1142_v48 = vmul.f32 %v3169_v17, %v3168_v49  ;;  %v3172_v4 = vunpack.c.l.bf16 %v2735_v63  ;;  %v3175_v8 = vunpack.c.l.bf16 %v2740_v59  ;;  %v3174_v44 = vperm.slane %v2725_v5, 0 }
  0xa6   :  { %v1115_v38 = vsub.f32 %v1106_v55, %v1113_v6  ;;  %v1149_v60 = vmul.f32 %v3170_v27, %v3171_v12  ;;  %v3173_v16 = vperm.slane %v2752_v57, 0  ;;  %v1081_v30 = vadd.f32 %v1079_v31, %v1045_v21 }
  0xa7   :  { %v3176_v62 = vunpack.c.h.bf16 %v2517_v33  ;;  %v3179_v11 = vunpack.c.h.bf16 %v2522_v32  ;;  %v3177_v49 = vperm.slane %v2512_v14, 1  ;;  %v1178_v55 = vmul.f32 %v3174_v44, %v3172_v4 }
  0xa8   :  { %v1151_v17 = vsub.f32 %v1142_v48, %v1149_v60  ;;  %v1185_v6 = vmul.f32 %v3173_v16, %v3175_v8  ;;  %v3178_v27 = vperm.slane %v2533_v56, 1  ;;  %v1117_v31 = vadd.f32 %v1115_v38, %v1081_v30 }
  0xa9   :  { %v927_v21 = vmul.f32 %v3177_v49, %v3176_v62  ;;  %v3180_v48 = vunpack.c.h.bf16 %v2554_v34  ;;  %v3191_v60 = vunpack.c.h.bf16 %v2559_v22  ;;  %v3182_v16 = vperm.slane %v2538_v9, 1 }
  0xaa   :  { %v1187_v12 = vsub.f32 %v1178_v55, %v1185_v6  ;;  %v934_v4 = vmul.f32 %v3178_v27, %v3179_v11  ;;  %v3181_v44 = vperm.slane %v2549_v26, 1  ;;  %v1153_v38 = vadd.f32 %v1151_v17, %v1117_v31 }
  0xab   :  { %v3183_v30 = vunpack.c.h.bf16 %v2571_v37  ;;  %v3186_v8 = vunpack.c.h.bf16 %v2583_v29  ;;  %v3184_v62 = vperm.slane %v2566_v61, 1  ;;  %v963_v55 = vmul.f32 %v3182_v16, %v3180_v48 }
  0xac   :  { %v936_v49 = vsub.f32 %v927_v21, %v934_v4  ;;  %v970_v6 = vmul.f32 %v3181_v44, %v3191_v60  ;;  %v3185_v27 = vperm.slane %v2578_v41, 1  ;;  %v1189_v17 = vadd.f32 %v1187_v12, %v1153_v38 }
  0xad   :  { %v999_v31 = vmul.f32 %v3184_v62, %v3183_v30  ;;  %v3187_v4 = vunpack.c.h.bf16 %v2610_v53  ;;  %v3190_v21 = vunpack.c.h.bf16 %v2615_v50  ;;  %v3188_v44 = vperm.slane %v2591_v24, 1 }
  0xae   :  { %v972_v11 = vsub.f32 %v963_v55, %v970_v6  ;;  %v1006_v48 = vmul.f32 %v3185_v27, %v3186_v8  ;;  %v3189_v16 = vperm.slane %v2605_v52, 1  ;;  %1381 = vst [vmem:[%s3023_s4 + $0x30] sm:$0xff] %v1189_v17  ;;  %v3192_v12 = vunpack.c.h.bf16 %v2645_v10 }
  0xaf   :  { %v1064_v38 = vunpack.c.h.bf16 %v2650_v23  ;;  %v3193_v30 = vperm.slane %v2630_v54, 1  ;;  %v3195_v55 = vperm.slane %v2640_v3, 1  ;;  %v1035_v27 = vmul.f32 %v3188_v44, %v3187_v4 }
  0xb0   :  { %v974_v6 = vadd.f32 %v972_v11, %v936_v49  ;;  %v1008_v62 = vsub.f32 %v999_v31, %v1006_v48  ;;  %v1042_v17 = vmul.f32 %v3189_v16, %v3190_v21  ;;  %v3197_v49 = vunpack.c.h.bf16 %v2677_v51 }
  0xb1   :  { %v1071_v8 = vmul.f32 %v3193_v30, %v3192_v12  ;;  %v1078_v11 = vmul.f32 %v3195_v55, %v1064_v38  ;;  %v1100_v48 = vunpack.c.h.bf16 %v2682_v15  ;;  %v1103_v44 = vperm.slane %v2662_v28, 1 }
  0xb2   :  { %v1010_v31 = vadd.f32 %v1008_v62, %v974_v6  ;;  %v1044_v4 = vsub.f32 %v1035_v27, %v1042_v17  ;;  %v3196_v16 = vperm.slane %v2672_v36, 1  ;;  %v3198_v60 = vunpack.c.h.bf16 %v2708_v46 }
  0xb3   :  { %v1080_v21 = vsub.f32 %v1071_v8, %v1078_v11  ;;  %v1136_v12 = vunpack.c.h.bf16 %v2713_v7  ;;  %v3199_v30 = vperm.slane %v2694_v58, 1  ;;  %v1107_v55 = vmul.f32 %v1103_v44, %v3197_v49 }
  0xb4   :  { %v1046_v25 = vadd.f32 %v1044_v4, %v1010_v31  ;;  %v1114_v27 = vmul.f32 %v3196_v16, %v1100_v48  ;;  %v1146_v62 = vperm.slane %v2703_v47, 1  ;;  %v3200_v6 = vunpack.c.h.bf16 %v2735_v63 }
  0xb5   :  { %v1143_v8 = vmul.f32 %v3199_v30, %v3198_v60  ;;  %v1172_v4 = vunpack.c.h.bf16 %v2740_v59  ;;  %v1175_v17 = vperm.slane %v2725_v5, 1  ;;  %v3201_v49 = vperm.slane %v2752_v57, 1 }
  0xb6   :  { %v1082_v11 = vadd.f32 %v1080_v21, %v1046_v25  ;;  %v1116_v31 = vsub.f32 %v1107_v55, %v1114_v27  ;;  %v1150_v16 = vmul.f32 %v1146_v62, %v1136_v12  ;;  %v939_v30 = vmul.f32 %v922_v1, %v919_v43 }
  0xb7   :  { %v1179_v60 = vmul.f32 %v1175_v17, %v3200_v6  ;;  %v941_v25 = vmul.f32 %v929_v42, %v916_v2  ;;  %v975_v21 = vmul.f32 %v958_v35, %v955_v20  ;;  %v1186_v6 = vmul.f32 %v3201_v49, %v1172_v4 }
  0xb8   :  { %v1118_v55 = vadd.f32 %v1116_v31, %v1082_v11  ;;  %v1152_v27 = vsub.f32 %v1143_v8, %v1150_v16  ;;  %v977_v43 = vmul.f32 %v965_v18, %v952_v39  ;;  %v1011_v2 = vmul.f32 %v994_v45, %v991_v19 }
  0xb9   :  { %v943_v1 = vadd.f32 %v941_v25, %v939_v30  ;;  %v1013_v42 = vmul.f32 %v1001_v40, %v988_v13  ;;  %v3337_v20 = vperm.slane %v2591_v24, 0  ;;  %v1188_v8 = vsub.f32 %v1179_v60, %v1186_v6 }
  0xba   :  { %v1154_v16 = vadd.f32 %v1152_v27, %v1118_v55  ;;  %v979_v11 = vadd.f32 %v977_v43, %v975_v21  ;;  %v3338_v39 = vunpack.c.l.bf16 %v2610_v53  ;;  %v3339_v18 = vperm.slane %v2605_v52, 0 }
  0xbb   :  { %v1047_v35 = vmul.f32 %v3337_v20, %v1027_v0  ;;  %v1015_v31 = vadd.f32 %v1013_v42, %v1011_v2  ;;  %v3340_v19 = vunpack.c.l.bf16 %v2650_v23  ;;  %v3341_v45 = vperm.slane %v2630_v54, 0 }
  0xbc   :  { %v1049_v30 = vmul.f32 %v3339_v18, %v3338_v39  ;;  %v3342_v13 = vunpack.c.l.bf16 %v2645_v10  ;;  %v3343_v40 = vperm.slane %v2640_v3, 0  ;;  %v3344_v0 = vunpack.c.l.bf16 %v2682_v15 }
  0xbd   :  { %v1083_v25 = vmul.f32 %v3341_v45, %v3340_v19  ;;  %v3345_v60 = vperm.slane %v2662_v28, 0  ;;  %v1190_v21 = vadd.f32 %v1188_v8, %v1154_v16  ;;  %v981_v55 = vadd.f32 %v979_v11, %v943_v1 }
  0xbe   :  { %v1085_v49 = vmul.f32 %v3343_v40, %v3342_v13  ;;  %v1051_v27 = vadd.f32 %v1049_v30, %v1047_v35  ;;  %v3346_v43 = vunpack.c.l.bf16 %v2677_v51  ;;  %v3347_v2 = vperm.slane %v2672_v36, 0 }
  0xbf   :  { %v1119_v6 = vmul.f32 %v3345_v60, %v3344_v0  ;;  %v3348_v39 = vunpack.c.l.bf16 %v2713_v7  ;;  %v3349_v18 = vperm.slane %v2694_v58, 0  ;;  %v3350_v45 = vunpack.c.l.bf16 %v2708_v46  ;;  %1382 = vst [vmem:[%s3023_s4 + $0x38] sm:$0xff] %v1190_v21 }
  0xc0   :  { %v1121_v42 = vmul.f32 %v3347_v2, %v3346_v43  ;;  %v1087_v20 = vadd.f32 %v1085_v49, %v1083_v25  ;;  %v3351_v13 = vperm.slane %v2703_v47, 0  ;;  %v1017_v1 = vadd.f32 %v1015_v31, %v981_v55 }
  0xc1   :  { %v1155_v19 = vmul.f32 %v3349_v18, %v3348_v39  ;;  %v3352_v16 = vunpack.c.l.bf16 %v2740_v59  ;;  %v3353_v49 = vperm.slane %v2725_v5, 0  ;;  %v3354_v11 = vunpack.c.h.bf16 %v2522_v32 }
  0xc2   :  { %v1157_v40 = vmul.f32 %v3351_v13, %v3350_v45  ;;  %v1123_v35 = vadd.f32 %v1121_v42, %v1119_v6  ;;  %v3355_v30 = vperm.slane %v2512_v14, 1  ;;  %v3356_v0 = vunpack.c.l.bf16 %v2735_v63 }
  0xc3   :  { %v1191_v8 = vmul.f32 %v3353_v49, %v3352_v16  ;;  %v3357_v60 = vperm.slane %v2752_v57, 0  ;;  %v3358_v2 = vunpack.c.h.bf16 %v2517_v33  ;;  %v3359_v31 = vperm.slane %v2533_v56, 1 }
  0xc4   :  { %v940_v25 = vmul.f32 %v3355_v30, %v3354_v11  ;;  %v3360_v21 = vunpack.c.h.bf16 %v2559_v22  ;;  %v3361_v55 = vperm.slane %v2538_v9, 1  ;;  %v3362_v32 = vunpack.c.h.bf16 %v2554_v34 }
  0xc5   :  { %v1193_v43 = vmul.f32 %v3357_v60, %v3356_v0  ;;  %v942_v6 = vmul.f32 %v3359_v31, %v3358_v2  ;;  %v3363_v14 = vperm.slane %v2549_v26, 1  ;;  %v1053_v18 = vadd.f32 %v1051_v27, %v1017_v1 }
  0xc6   :  { %v976_v42 = vmul.f32 %v3361_v55, %v3360_v21  ;;  %v1159_v45 = vadd.f32 %v1157_v40, %v1155_v19  ;;  %v3364_v13 = vunpack.c.h.bf16 %v2583_v29  ;;  %v3365_v16 = vperm.slane %v2566_v61, 1 }
  0xc7   :  { %v978_v39 = vmul.f32 %v3363_v14, %v3362_v32  ;;  %v3366_v56 = vunpack.c.h.bf16 %v2571_v37  ;;  %v3367_v49 = vperm.slane %v2578_v41, 1  ;;  %v944_v11 = vadd.f32 %v942_v6, %v940_v25 }
  0xc8   :  { %v1012_v33 = vmul.f32 %v3365_v16, %v3364_v13  ;;  %v3368_v30 = vunpack.c.h.bf16 %v2615_v50  ;;  %v3369_v34 = vperm.slane %v2591_v24, 1  ;;  %v3370_v27 = vunpack.c.h.bf16 %v2610_v53 }
  0xc9   :  { %v1014_v22 = vmul.f32 %v3367_v49, %v3366_v56  ;;  %v980_v9 = vadd.f32 %v978_v39, %v976_v42  ;;  %v3371_v19 = vperm.slane %v2605_v52, 1  ;;  %v1089_v40 = vadd.f32 %v1087_v20, %v1053_v18 }
  0xca   :  { %v1048_v26 = vmul.f32 %v3369_v34, %v3368_v30  ;;  %v3372_v37 = vperm.slane %v2630_v54, 1  ;;  %v3373_v1 = vunpack.c.h.bf16 %v2645_v10  ;;  %v3374_v25 = vperm.slane %v2640_v3, 1 }
  0xcb   :  { %v1050_v29 = vmul.f32 %v3371_v19, %v3370_v27  ;;  %v1016_v61 = vadd.f32 %v1014_v22, %v1012_v33  ;;  %v982_v0 = vadd.f32 %v980_v9, %v944_v11  ;;  %v1120_v52 = vmul.f32 %v1103_v44, %v1100_v48 }
  0xcc   :  { %v1084_v41 = vmul.f32 %v3372_v37, %v1064_v38  ;;  %v1086_v50 = vmul.f32 %v3374_v25, %v3373_v1  ;;  %v3375_v53 = vunpack.c.h.bf16 %v2677_v51  ;;  %v3376_v20 = vperm.slane %v2672_v36, 1 }
  0xcd   :  { %v1052_v24 = vadd.f32 %v1050_v29, %v1048_v26  ;;  %v1125_v60 = vadd.f32 %v1123_v35, %v1089_v40  ;;  %v1195_v54 = vadd.f32 %v1193_v43, %v1191_v8  ;;  %v1018_v38 = vadd.f32 %v1016_v61, %v982_v0 }
  0xce   :  { %v1122_v23 = vmul.f32 %v3376_v20, %v3375_v53  ;;  %v1088_v2 = vadd.f32 %v1086_v50, %v1084_v41  ;;  %v3377_v3 = vperm.slane %v2694_v58, 1  ;;  %v3378_v31 = vunpack.c.h.bf16 %v2708_v46 }
  0xcf   :  { %v1161_v15 = vadd.f32 %v1159_v45, %v1125_v60  ;;  %v1054_v44 = vadd.f32 %v1052_v24, %v1018_v38  ;;  %v1192_v36 = vmul.f32 %v1175_v17, %v1172_v4  ;;  %v3379_v48 = vunpack.c.h.bf16 %v2735_v63 }
  0xd0   :  { %v1156_v10 = vmul.f32 %v3377_v3, %v1136_v12  ;;  %v1158_v28 = vmul.f32 %v1146_v62, %v3378_v31  ;;  %v1124_v51 = vadd.f32 %v1122_v23, %v1120_v52  ;;  %v3380_v7 = vperm.slane %v2752_v57, 1 }
  0xd1   :  { %v1197_v58 = vadd.f32 %v1195_v54, %v1161_v15  ;;  %v1090_v12 = vadd.f32 %v1088_v2, %v1054_v44 }
  0xd2   :  { %v1194_v35 = vmul.f32 %v3380_v7, %v3379_v48  ;;  %v1160_v8 = vadd.f32 %v1158_v28, %v1156_v10 }
  0xd3   :  { %1383 = vst [vmem:[%s3024_s5 + $0x30] sm:$0xff] %v1197_v58  ;;  %v1126_v47 = vadd.f32 %v1124_v51, %v1090_v12 }
  0xd4   :  { %v1196_v46 = vadd.f32 %v1194_v35, %v1192_v36 }
  0xd5   :  { %v1162_v62 = vadd.f32 %v1160_v8, %v1126_v47 }
  0xd7   :  { %v1198_v43 = vadd.f32 %v1196_v46, %v1162_v62 }
  0xd9   :  { %1384 = vst [vmem:[%s3024_s5 + $0x38] sm:$0xff] %v1198_v43 }

</bundles_post_ra>
